<compile_context>
chip_gen: v5e
topology: v5e:2x2
jax: 0.10.0
libtpu: 0.0.40
codegen_flags: <defaults>
</compile_context>

<pallas_src>
import jax
import jax.numpy as jnp
import numpy as np
from jax.experimental import pallas as pl
from jax.experimental.pallas import tpu as pltpu

# ---- model config (module defaults, small sequence/batch) ----
D_FEAT = 6      # d_feat
HID = 64        # hidden_size
T = 8           # sequence length
N = 8           # batch
NUM_LAYERS = 2  # (hard-wired: layer-0 + layer-1 wavefront below)


def gru_kernel(x_ref,
               w0i_ref, w0h_ref, b0i_ref, b0hn_ref,
               w1_ref, b1rz_ref, b1in_ref, b1hn_ref,
               wout_ref, bout_ref,
               out_ref):
    H = HID

    # ---- hoisted fused input->gates projection for layer 0 (off the serial path) ----
    # x is time-major bf16 (T*N, D); single matmul for all gates, r/z biases folded.
    gi = jnp.dot(x_ref[...], w0i_ref[...],
                 preferred_element_type=jnp.float32) + b0i_ref[...]     # (T*N, 3H) f32
    gi_rz = gi[:, :2 * H]                                               # (T*N, 2H)
    gi_n = gi[:, 2 * H:]                                                # (T*N, H)

    # ---- hoisted bias broadcasts (no per-step broadcast_in_dim) ----
    b0hn = jnp.broadcast_to(b0hn_ref[...], (N, H))
    b1rz = jnp.broadcast_to(b1rz_ref[...], (N, 2 * H))
    b1in = jnp.broadcast_to(b1in_ref[...], (N, H))
    b1hn = jnp.broadcast_to(b1hn_ref[...], (N, H))

    h0 = jnp.zeros((N, H), jnp.float32)
    h1 = jnp.zeros((N, H), jnp.float32)

    for t in range(T):                       # static unrolled wavefront time loop
        lo = t * N

        # -------- layer 0 step: ONE fused (N,H)x(H,3H) recurrent matmul --------
        gh0 = jnp.dot(h0.astype(jnp.bfloat16), w0h_ref[...],
                      preferred_element_type=jnp.float32)               # (N, 3H)
        rz0 = jax.nn.sigmoid(gi_rz[lo:lo + N, :] + gh0[:, :2 * H])      # one sigmoid for r|z
        r0 = rz0[:, :H]
        z0 = rz0[:, H:]
        n0 = jnp.tanh(gi_n[lo:lo + N, :] + r0 * (gh0[:, 2 * H:] + b0hn))
        h0 = (1.0 - z0) * n0 + z0 * h0

        # -------- layer 1 step (wavefront): ONE (N,2H)x(2H,4H) matmul --------
        # lhs = [h1_{t-1} | h0_t] is a single lane-dense (8,128) operand; the stacked
        # weight columns are [r | z | n_i | n_h].
        lhs1 = jnp.concatenate([h1, h0], axis=1).astype(jnp.bfloat16)   # (N, 2H)
        g1 = jnp.dot(lhs1, w1_ref[...],
                     preferred_element_type=jnp.float32)                # (N, 4H)
        rz1 = jax.nn.sigmoid(g1[:, :2 * H] + b1rz)                      # one sigmoid for r|z
        r1 = rz1[:, :H]
        z1 = rz1[:, H:]
        n1 = jnp.tanh(g1[:, 2 * H:3 * H] + b1in + r1 * (g1[:, 3 * H:] + b1hn))
        h1 = (1.0 - z1) * n1 + z1 * h1

    # ---- fc_out: VPU multiply + lane reduction (avoid 1-column MXU matmul) ----
    pred = jnp.sum(h1 * wout_ref[...], axis=-1, keepdims=True) + bout_ref[...]
    out_ref[...] = pred                                                 # (N, 1)


def make_params(key):
    """Parameters in PyTorch nn.GRU / nn.Linear layout."""
    ks = jax.random.split(key, 12)
    s = 0.1
    p = {}
    # GRU layer 0: input size D_FEAT
    p["wih0"] = (jax.random.normal(ks[0], (3 * HID, D_FEAT)) * s).astype(jnp.float32)
    p["whh0"] = (jax.random.normal(ks[1], (3 * HID, HID)) * s).astype(jnp.float32)
    p["bih0"] = (jax.random.normal(ks[2], (3 * HID,)) * s).astype(jnp.float32)
    p["bhh0"] = (jax.random.normal(ks[3], (3 * HID,)) * s).astype(jnp.float32)
    # GRU layer 1: input size HID
    p["wih1"] = (jax.random.normal(ks[4], (3 * HID, HID)) * s).astype(jnp.float32)
    p["whh1"] = (jax.random.normal(ks[5], (3 * HID, HID)) * s).astype(jnp.float32)
    p["bih1"] = (jax.random.normal(ks[6], (3 * HID,)) * s).astype(jnp.float32)
    p["bhh1"] = (jax.random.normal(ks[7], (3 * HID,)) * s).astype(jnp.float32)
    # fc_out: Linear(HID, 1)
    p["wout"] = (jax.random.normal(ks[8], (1, HID)) * s).astype(jnp.float32)
    p["bout"] = (jax.random.normal(ks[9], (1,)) * s).astype(jnp.float32)
    return p


def _prep_layer0(wih, whh, bih, bhh):
    """Fused gate packing for layer 0, gate order [r|z|n].

    Returns:
      w_i  (D, 3H)  bf16  : input->gates weight (hoisted projection)
      w_h  (H, 3H)  bf16  : recurrent weight (one matmul per step)
      b_i  (1, 3H)  f32   : [b_ir+b_hr | b_iz+b_hz | b_in]  (folded into gi)
      b_hn (1, H)   f32   : b_hn (kept inside r*(...))
    """
    H = HID
    w_i = jnp.concatenate([wih[:H].T, wih[H:2 * H].T, wih[2 * H:].T], axis=1)
    w_h = jnp.concatenate([whh[:H].T, whh[H:2 * H].T, whh[2 * H:].T], axis=1)
    b_i = jnp.concatenate([bih[:H] + bhh[:H],
                           bih[H:2 * H] + bhh[H:2 * H],
                           bih[2 * H:]]).reshape(1, 3 * H)
    b_hn = bhh[2 * H:].reshape(1, H)
    return (w_i.astype(jnp.bfloat16), w_h.astype(jnp.bfloat16),
            b_i.astype(jnp.float32), b_hn.astype(jnp.float32))


def _prep_layer1(wih, whh, bih, bhh):
    """Stacked weight for the fused layer-1 step.

    lhs per step is [h1_{t-1} | h0_t] (N, 2H); columns are [r | z | n_i | n_h]:
      rows 0:H   (multiply h1_{t-1}):  [W_hr.T | W_hz.T |   0    | W_hn.T]
      rows H:2H  (multiply h0_t    ):  [W_ir.T | W_iz.T | W_in.T |   0   ]
    """
    H = HID
    Z = jnp.zeros((H, H), jnp.float32)
    top = jnp.concatenate([whh[:H].T, whh[H:2 * H].T, Z, whh[2 * H:].T], axis=1)
    bot = jnp.concatenate([wih[:H].T, wih[H:2 * H].T, wih[2 * H:].T, Z], axis=1)
    w1 = jnp.concatenate([top, bot], axis=0)                    # (2H, 4H)
    b_rz = (bih[:2 * H] + bhh[:2 * H]).reshape(1, 2 * H)
    b_in = bih[2 * H:].reshape(1, H)
    b_hn = bhh[2 * H:].reshape(1, H)
    return (w1.astype(jnp.bfloat16), b_rz.astype(jnp.float32),
            b_in.astype(jnp.float32), b_hn.astype(jnp.float32))


def gru_forward(x_flat, p):
    # glue (XLA-side, not in-kernel): view(N, d_feat, -1).permute(0, 2, 1) then flatten
    # TIME-MAJOR so each timestep is a contiguous (N, d_feat) sublane-aligned block.
    x = x_flat.reshape(N, D_FEAT, T).transpose(2, 0, 1).reshape(T * N, D_FEAT)
    x = x.astype(jnp.bfloat16)                                   # MXU operand only

    w0i, w0h, b0i, b0hn = _prep_layer0(p["wih0"], p["whh0"], p["bih0"], p["bhh0"])
    w1, b1rz, b1in, b1hn = _prep_layer1(p["wih1"], p["whh1"], p["bih1"], p["bhh1"])
    wout = p["wout"].astype(jnp.float32)                         # (1, HID)
    bout = p["bout"].reshape(1, 1).astype(jnp.float32)           # (1, 1)

    args = (x, w0i, w0h, b0i, b0hn, w1, b1rz, b1in, b1hn, wout, bout)
    out = pl.pallas_call(
        gru_kernel,
        out_shape=jax.ShapeDtypeStruct((N, 1), jnp.float32),
        in_specs=[pl.BlockSpec(memory_space=pltpu.MemorySpace.VMEM)] * len(args),
        out_specs=pl.BlockSpec(memory_space=pltpu.MemorySpace.VMEM),
    )(*args)
    return out[:, 0]                                             # (N,), matches .squeeze()


def gru_reference(x_flat, p):
    """Pure-JAX f32 reference mirroring the PyTorch forward."""
    x = x_flat.reshape(N, D_FEAT, T).transpose(0, 2, 1).astype(jnp.float32)  # (N, T, F)

    def gru_layer(inp, wih, whh, bih, bhh):
        H = HID
        h = jnp.zeros((inp.shape[0], H), jnp.float32)
        hs = []
        for t in range(inp.shape[1]):
            gi = inp[:, t, :] @ wih.T + bih
            gh = h @ whh.T + bhh
            r = jax.nn.sigmoid(gi[:, :H] + gh[:, :H])
            z = jax.nn.sigmoid(gi[:, H:2 * H] + gh[:, H:2 * H])
            n = jnp.tanh(gi[:, 2 * H:] + r * gh[:, 2 * H:])
            h = (1.0 - z) * n + z * h
            hs.append(h)
        return jnp.stack(hs, axis=1)

    l0 = gru_layer(x, p["wih0"], p["whh0"], p["bih0"], p["bhh0"])
    l1 = gru_layer(l0, p["wih1"], p["whh1"], p["bih1"], p["bhh1"])
    last = l1[:, -1, :]                                          # (N, HID)
    return (last @ p["wout"].T + p["bout"])[:, 0]                # (N,)


if __name__ == "__main__":
    key = jax.random.PRNGKey(0)
    k_x, k_p = jax.random.split(key)
    x_flat = jax.random.normal(k_x, (N, D_FEAT * T), dtype=jnp.float32)
    params = make_params(k_p)

    y = jax.block_until_ready(gru_forward(x_flat, params))
    y_ref = jax.block_until_ready(gru_reference(x_flat, params))

    assert y.shape == (N,), y.shape
    # bf16 MXU operands accumulate a little drift over the T=8 recurrence vs the
    # f32 reference; tolerance loosened accordingly (per review).
    np.testing.assert_allclose(np.asarray(y), np.asarray(y_ref), rtol=3e-2, atol=3e-2)
    print("KERNEL_OK")
</pallas_src>

<mosaic_0001>
module attributes {stable_mosaic.version = 11 : i64} {
  func.func @gru_kernel(%arg0: memref<64x6xbf16, #tpu.memory_space<vmem>>, %arg1: memref<6x192xbf16, #tpu.memory_space<vmem>>, %arg2: memref<64x192xbf16, #tpu.memory_space<vmem>>, %arg3: memref<1x192xf32, #tpu.memory_space<vmem>>, %arg4: memref<1x64xf32, #tpu.memory_space<vmem>>, %arg5: memref<128x256xbf16, #tpu.memory_space<vmem>>, %arg6: memref<1x128xf32, #tpu.memory_space<vmem>>, %arg7: memref<1x64xf32, #tpu.memory_space<vmem>>, %arg8: memref<1x64xf32, #tpu.memory_space<vmem>>, %arg9: memref<1x64xf32, #tpu.memory_space<vmem>>, %arg10: memref<1x1xf32, #tpu.memory_space<vmem>>, %arg11: memref<8x1xf32, #tpu.memory_space<vmem>>) attributes {dimension_semantics = [], scalar_prefetch = 0 : i64, scratch_operands = 0 : i64, tpu.core_type = #tpu.core_type<tc>} {
    %c0 = arith.constant 0 : index
    %c0_0 = arith.constant 0 : index
    %0 = vector.load %arg0[%c0, %c0_0] : memref<64x6xbf16, #tpu.memory_space<vmem>>, vector<64x6xbf16>
    %c0_1 = arith.constant 0 : index
    %c0_2 = arith.constant 0 : index
    %1 = vector.load %arg1[%c0_1, %c0_2] : memref<6x192xbf16, #tpu.memory_space<vmem>>, vector<6x192xbf16>
    %cst = arith.constant dense<0.000000e+00> : vector<64x192xf32>
    %2 = tpu.matmul %0, %1, %cst {dimension_numbers = #tpu.dot_dimension_numbers<[1], [0], [0], [1], [0, 0, 1, 1], [], []>} : vector<64x6xbf16>, vector<6x192xbf16>, vector<64x192xf32> -> vector<64x192xf32>
    %c0_3 = arith.constant 0 : index
    %c0_4 = arith.constant 0 : index
    %3 = vector.load %arg3[%c0_3, %c0_4] : memref<1x192xf32, #tpu.memory_space<vmem>>, vector<1x192xf32>
    %4 = vector.broadcast %3 : vector<1x192xf32> to vector<64x192xf32>
    %5 = arith.addf %2, %4 : vector<64x192xf32>
    %6 = vector.extract_strided_slice %5 {offsets = [0, 0], sizes = [64, 128], strides = [1, 1]} : vector<64x192xf32> to vector<64x128xf32>
    %7 = vector.extract_strided_slice %5 {offsets = [0, 128], sizes = [64, 64], strides = [1, 1]} : vector<64x192xf32> to vector<64x64xf32>
    %c0_5 = arith.constant 0 : index
    %c0_6 = arith.constant 0 : index
    %8 = vector.load %arg4[%c0_5, %c0_6] : memref<1x64xf32, #tpu.memory_space<vmem>>, vector<1x64xf32>
    %9 = vector.shape_cast %8 : vector<1x64xf32> to vector<1x64xf32>
    %10 = vector.broadcast %9 : vector<1x64xf32> to vector<8x64xf32>
    %c0_7 = arith.constant 0 : index
    %c0_8 = arith.constant 0 : index
    %11 = vector.load %arg6[%c0_7, %c0_8] : memref<1x128xf32, #tpu.memory_space<vmem>>, vector<1x128xf32>
    %12 = vector.shape_cast %11 : vector<1x128xf32> to vector<1x128xf32>
    %13 = vector.broadcast %12 : vector<1x128xf32> to vector<8x128xf32>
    %c0_9 = arith.constant 0 : index
    %c0_10 = arith.constant 0 : index
    %14 = vector.load %arg7[%c0_9, %c0_10] : memref<1x64xf32, #tpu.memory_space<vmem>>, vector<1x64xf32>
    %15 = vector.shape_cast %14 : vector<1x64xf32> to vector<1x64xf32>
    %16 = vector.broadcast %15 : vector<1x64xf32> to vector<8x64xf32>
    %c0_11 = arith.constant 0 : index
    %c0_12 = arith.constant 0 : index
    %17 = vector.load %arg8[%c0_11, %c0_12] : memref<1x64xf32, #tpu.memory_space<vmem>>, vector<1x64xf32>
    %18 = vector.shape_cast %17 : vector<1x64xf32> to vector<1x64xf32>
    %19 = vector.broadcast %18 : vector<1x64xf32> to vector<8x64xf32>
    %cst_13 = arith.constant 0.000000e+00 : f32
    %20 = vector.broadcast %cst_13 : f32 to vector<8x64xf32>
    %cst_14 = arith.constant 0.000000e+00 : f32
    %21 = vector.broadcast %cst_14 : f32 to vector<8x64xf32>
    %22 = arith.truncf %20 : vector<8x64xf32> to vector<8x64xbf16>
    %c0_15 = arith.constant 0 : index
    %c0_16 = arith.constant 0 : index
    %23 = vector.load %arg2[%c0_15, %c0_16] : memref<64x192xbf16, #tpu.memory_space<vmem>>, vector<64x192xbf16>
    %cst_17 = arith.constant dense<0.000000e+00> : vector<8x192xf32>
    %24 = tpu.matmul %22, %23, %cst_17 {dimension_numbers = #tpu.dot_dimension_numbers<[1], [0], [0], [1], [0, 0, 1, 1], [], []>} : vector<8x64xbf16>, vector<64x192xbf16>, vector<8x192xf32> -> vector<8x192xf32>
    %25 = vector.extract_strided_slice %6 {offsets = [0, 0], sizes = [8, 128], strides = [1, 1]} : vector<64x128xf32> to vector<8x128xf32>
    %26 = vector.extract_strided_slice %24 {offsets = [0, 0], sizes = [8, 128], strides = [1, 1]} : vector<8x192xf32> to vector<8x128xf32>
    %27 = arith.addf %25, %26 : vector<8x128xf32>
    %28 = arith.negf %27 : vector<8x128xf32>
    %29 = math.exp %28 : vector<8x128xf32>
    %cst_18 = arith.constant 1.000000e+00 : f32
    %30 = vector.broadcast %cst_18 : f32 to vector<8x128xf32>
    %31 = arith.addf %30, %29 : vector<8x128xf32>
    %32 = arith.divf %30, %31 : vector<8x128xf32>
    %33 = vector.extract_strided_slice %32 {offsets = [0, 0], sizes = [8, 64], strides = [1, 1]} : vector<8x128xf32> to vector<8x64xf32>
    %34 = vector.extract_strided_slice %32 {offsets = [0, 64], sizes = [8, 64], strides = [1, 1]} : vector<8x128xf32> to vector<8x64xf32>
    %35 = vector.extract_strided_slice %7 {offsets = [0, 0], sizes = [8, 64], strides = [1, 1]} : vector<64x64xf32> to vector<8x64xf32>
    %36 = vector.extract_strided_slice %24 {offsets = [0, 128], sizes = [8, 64], strides = [1, 1]} : vector<8x192xf32> to vector<8x64xf32>
    %37 = arith.addf %36, %10 : vector<8x64xf32>
    %38 = arith.mulf %33, %37 : vector<8x64xf32>
    %39 = arith.addf %35, %38 : vector<8x64xf32>
    %40 = math.tanh %39 : vector<8x64xf32>
    %cst_19 = arith.constant 1.000000e+00 : f32
    %41 = vector.broadcast %cst_19 : f32 to vector<8x64xf32>
    %42 = arith.subf %41, %34 : vector<8x64xf32>
    %43 = arith.mulf %42, %40 : vector<8x64xf32>
    %44 = arith.mulf %34, %20 : vector<8x64xf32>
    %45 = arith.addf %43, %44 : vector<8x64xf32>
    %46 = tpu.concatenate %21, %45 in 1 : vector<8x64xf32>, vector<8x64xf32> -> vector<8x128xf32>
    %47 = arith.truncf %46 : vector<8x128xf32> to vector<8x128xbf16>
    %c0_20 = arith.constant 0 : index
    %c0_21 = arith.constant 0 : index
    %48 = vector.load %arg5[%c0_20, %c0_21] : memref<128x256xbf16, #tpu.memory_space<vmem>>, vector<128x256xbf16>
    %cst_22 = arith.constant dense<0.000000e+00> : vector<8x256xf32>
    %49 = tpu.matmul %47, %48, %cst_22 {dimension_numbers = #tpu.dot_dimension_numbers<[1], [0], [0], [1], [0, 0, 1, 1], [], []>} : vector<8x128xbf16>, vector<128x256xbf16>, vector<8x256xf32> -> vector<8x256xf32>
    %50 = vector.extract_strided_slice %49 {offsets = [0, 0], sizes = [8, 128], strides = [1, 1]} : vector<8x256xf32> to vector<8x128xf32>
    %51 = arith.addf %50, %13 : vector<8x128xf32>
    %52 = arith.negf %51 : vector<8x128xf32>
    %53 = math.exp %52 : vector<8x128xf32>
    %cst_23 = arith.constant 1.000000e+00 : f32
    %54 = vector.broadcast %cst_23 : f32 to vector<8x128xf32>
    %55 = arith.addf %54, %53 : vector<8x128xf32>
    %56 = arith.divf %54, %55 : vector<8x128xf32>
    %57 = vector.extract_strided_slice %56 {offsets = [0, 0], sizes = [8, 64], strides = [1, 1]} : vector<8x128xf32> to vector<8x64xf32>
    %58 = vector.extract_strided_slice %56 {offsets = [0, 64], sizes = [8, 64], strides = [1, 1]} : vector<8x128xf32> to vector<8x64xf32>
    %59 = vector.extract_strided_slice %49 {offsets = [0, 128], sizes = [8, 64], strides = [1, 1]} : vector<8x256xf32> to vector<8x64xf32>
    %60 = arith.addf %59, %16 : vector<8x64xf32>
    %61 = vector.extract_strided_slice %49 {offsets = [0, 192], sizes = [8, 64], strides = [1, 1]} : vector<8x256xf32> to vector<8x64xf32>
    %62 = arith.addf %61, %19 : vector<8x64xf32>
    %63 = arith.mulf %57, %62 : vector<8x64xf32>
    %64 = arith.addf %60, %63 : vector<8x64xf32>
    %65 = math.tanh %64 : vector<8x64xf32>
    %cst_24 = arith.constant 1.000000e+00 : f32
    %66 = vector.broadcast %cst_24 : f32 to vector<8x64xf32>
    %67 = arith.subf %66, %58 : vector<8x64xf32>
    %68 = arith.mulf %67, %65 : vector<8x64xf32>
    %69 = arith.mulf %58, %21 : vector<8x64xf32>
    %70 = arith.addf %68, %69 : vector<8x64xf32>
    %71 = arith.truncf %45 : vector<8x64xf32> to vector<8x64xbf16>
    %c0_25 = arith.constant 0 : index
    %c0_26 = arith.constant 0 : index
    %72 = vector.load %arg2[%c0_25, %c0_26] : memref<64x192xbf16, #tpu.memory_space<vmem>>, vector<64x192xbf16>
    %cst_27 = arith.constant dense<0.000000e+00> : vector<8x192xf32>
    %73 = tpu.matmul %71, %72, %cst_27 {dimension_numbers = #tpu.dot_dimension_numbers<[1], [0], [0], [1], [0, 0, 1, 1], [], []>} : vector<8x64xbf16>, vector<64x192xbf16>, vector<8x192xf32> -> vector<8x192xf32>
    %74 = vector.extract_strided_slice %6 {offsets = [8, 0], sizes = [8, 128], strides = [1, 1]} : vector<64x128xf32> to vector<8x128xf32>
    %75 = vector.extract_strided_slice %73 {offsets = [0, 0], sizes = [8, 128], strides = [1, 1]} : vector<8x192xf32> to vector<8x128xf32>
    %76 = arith.addf %74, %75 : vector<8x128xf32>
    %77 = arith.negf %76 : vector<8x128xf32>
    %78 = math.exp %77 : vector<8x128xf32>
    %cst_28 = arith.constant 1.000000e+00 : f32
    %79 = vector.broadcast %cst_28 : f32 to vector<8x128xf32>
    %80 = arith.addf %79, %78 : vector<8x128xf32>
    %81 = arith.divf %79, %80 : vector<8x128xf32>
    %82 = vector.extract_strided_slice %81 {offsets = [0, 0], sizes = [8, 64], strides = [1, 1]} : vector<8x128xf32> to vector<8x64xf32>
    %83 = vector.extract_strided_slice %81 {offsets = [0, 64], sizes = [8, 64], strides = [1, 1]} : vector<8x128xf32> to vector<8x64xf32>
    %84 = vector.extract_strided_slice %7 {offsets = [8, 0], sizes = [8, 64], strides = [1, 1]} : vector<64x64xf32> to vector<8x64xf32>
    %85 = vector.extract_strided_slice %73 {offsets = [0, 128], sizes = [8, 64], strides = [1, 1]} : vector<8x192xf32> to vector<8x64xf32>
    %86 = arith.addf %85, %10 : vector<8x64xf32>
    %87 = arith.mulf %82, %86 : vector<8x64xf32>
    %88 = arith.addf %84, %87 : vector<8x64xf32>
    %89 = math.tanh %88 : vector<8x64xf32>
    %cst_29 = arith.constant 1.000000e+00 : f32
    %90 = vector.broadcast %cst_29 : f32 to vector<8x64xf32>
    %91 = arith.subf %90, %83 : vector<8x64xf32>
    %92 = arith.mulf %91, %89 : vector<8x64xf32>
    %93 = arith.mulf %83, %45 : vector<8x64xf32>
    %94 = arith.addf %92, %93 : vector<8x64xf32>
    %95 = tpu.concatenate %70, %94 in 1 : vector<8x64xf32>, vector<8x64xf32> -> vector<8x128xf32>
    %96 = arith.truncf %95 : vector<8x128xf32> to vector<8x128xbf16>
    %c0_30 = arith.constant 0 : index
    %c0_31 = arith.constant 0 : index
    %97 = vector.load %arg5[%c0_30, %c0_31] : memref<128x256xbf16, #tpu.memory_space<vmem>>, vector<128x256xbf16>
    %cst_32 = arith.constant dense<0.000000e+00> : vector<8x256xf32>
    %98 = tpu.matmul %96, %97, %cst_32 {dimension_numbers = #tpu.dot_dimension_numbers<[1], [0], [0], [1], [0, 0, 1, 1], [], []>} : vector<8x128xbf16>, vector<128x256xbf16>, vector<8x256xf32> -> vector<8x256xf32>
    %99 = vector.extract_strided_slice %98 {offsets = [0, 0], sizes = [8, 128], strides = [1, 1]} : vector<8x256xf32> to vector<8x128xf32>
    %100 = arith.addf %99, %13 : vector<8x128xf32>
    %101 = arith.negf %100 : vector<8x128xf32>
    %102 = math.exp %101 : vector<8x128xf32>
    %cst_33 = arith.constant 1.000000e+00 : f32
    %103 = vector.broadcast %cst_33 : f32 to vector<8x128xf32>
    %104 = arith.addf %103, %102 : vector<8x128xf32>
    %105 = arith.divf %103, %104 : vector<8x128xf32>
    %106 = vector.extract_strided_slice %105 {offsets = [0, 0], sizes = [8, 64], strides = [1, 1]} : vector<8x128xf32> to vector<8x64xf32>
    %107 = vector.extract_strided_slice %105 {offsets = [0, 64], sizes = [8, 64], strides = [1, 1]} : vector<8x128xf32> to vector<8x64xf32>
    %108 = vector.extract_strided_slice %98 {offsets = [0, 128], sizes = [8, 64], strides = [1, 1]} : vector<8x256xf32> to vector<8x64xf32>
    %109 = arith.addf %108, %16 : vector<8x64xf32>
    %110 = vector.extract_strided_slice %98 {offsets = [0, 192], sizes = [8, 64], strides = [1, 1]} : vector<8x256xf32> to vector<8x64xf32>
    %111 = arith.addf %110, %19 : vector<8x64xf32>
    %112 = arith.mulf %106, %111 : vector<8x64xf32>
    %113 = arith.addf %109, %112 : vector<8x64xf32>
    %114 = math.tanh %113 : vector<8x64xf32>
    %cst_34 = arith.constant 1.000000e+00 : f32
    %115 = vector.broadcast %cst_34 : f32 to vector<8x64xf32>
    %116 = arith.subf %115, %107 : vector<8x64xf32>
    %117 = arith.mulf %116, %114 : vector<8x64xf32>
    %118 = arith.mulf %107, %70 : vector<8x64xf32>
    %119 = arith.addf %117, %118 : vector<8x64xf32>
    %120 = arith.truncf %94 : vector<8x64xf32> to vector<8x64xbf16>
    %c0_35 = arith.constant 0 : index
    %c0_36 = arith.constant 0 : index
    %121 = vector.load %arg2[%c0_35, %c0_36] : memref<64x192xbf16, #tpu.memory_space<vmem>>, vector<64x192xbf16>
    %cst_37 = arith.constant dense<0.000000e+00> : vector<8x192xf32>
    %122 = tpu.matmul %120, %121, %cst_37 {dimension_numbers = #tpu.dot_dimension_numbers<[1], [0], [0], [1], [0, 0, 1, 1], [], []>} : vector<8x64xbf16>, vector<64x192xbf16>, vector<8x192xf32> -> vector<8x192xf32>
    %123 = vector.extract_strided_slice %6 {offsets = [16, 0], sizes = [8, 128], strides = [1, 1]} : vector<64x128xf32> to vector<8x128xf32>
    %124 = vector.extract_strided_slice %122 {offsets = [0, 0], sizes = [8, 128], strides = [1, 1]} : vector<8x192xf32> to vector<8x128xf32>
    %125 = arith.addf %123, %124 : vector<8x128xf32>
    %126 = arith.negf %125 : vector<8x128xf32>
    %127 = math.exp %126 : vector<8x128xf32>
    %cst_38 = arith.constant 1.000000e+00 : f32
    %128 = vector.broadcast %cst_38 : f32 to vector<8x128xf32>
    %129 = arith.addf %128, %127 : vector<8x128xf32>
    %130 = arith.divf %128, %129 : vector<8x128xf32>
    %131 = vector.extract_strided_slice %130 {offsets = [0, 0], sizes = [8, 64], strides = [1, 1]} : vector<8x128xf32> to vector<8x64xf32>
    %132 = vector.extract_strided_slice %130 {offsets = [0, 64], sizes = [8, 64], strides = [1, 1]} : vector<8x128xf32> to vector<8x64xf32>
    %133 = vector.extract_strided_slice %7 {offsets = [16, 0], sizes = [8, 64], strides = [1, 1]} : vector<64x64xf32> to vector<8x64xf32>
    %134 = vector.extract_strided_slice %122 {offsets = [0, 128], sizes = [8, 64], strides = [1, 1]} : vector<8x192xf32> to vector<8x64xf32>
    %135 = arith.addf %134, %10 : vector<8x64xf32>
    %136 = arith.mulf %131, %135 : vector<8x64xf32>
    %137 = arith.addf %133, %136 : vector<8x64xf32>
    %138 = math.tanh %137 : vector<8x64xf32>
    %cst_39 = arith.constant 1.000000e+00 : f32
    %139 = vector.broadcast %cst_39 : f32 to vector<8x64xf32>
    %140 = arith.subf %139, %132 : vector<8x64xf32>
    %141 = arith.mulf %140, %138 : vector<8x64xf32>
    %142 = arith.mulf %132, %94 : vector<8x64xf32>
    %143 = arith.addf %141, %142 : vector<8x64xf32>
    %144 = tpu.concatenate %119, %143 in 1 : vector<8x64xf32>, vector<8x64xf32> -> vector<8x128xf32>
    %145 = arith.truncf %144 : vector<8x128xf32> to vector<8x128xbf16>
    %c0_40 = arith.constant 0 : index
    %c0_41 = arith.constant 0 : index
    %146 = vector.load %arg5[%c0_40, %c0_41] : memref<128x256xbf16, #tpu.memory_space<vmem>>, vector<128x256xbf16>
    %cst_42 = arith.constant dense<0.000000e+00> : vector<8x256xf32>
    %147 = tpu.matmul %145, %146, %cst_42 {dimension_numbers = #tpu.dot_dimension_numbers<[1], [0], [0], [1], [0, 0, 1, 1], [], []>} : vector<8x128xbf16>, vector<128x256xbf16>, vector<8x256xf32> -> vector<8x256xf32>
    %148 = vector.extract_strided_slice %147 {offsets = [0, 0], sizes = [8, 128], strides = [1, 1]} : vector<8x256xf32> to vector<8x128xf32>
    %149 = arith.addf %148, %13 : vector<8x128xf32>
    %150 = arith.negf %149 : vector<8x128xf32>
    %151 = math.exp %150 : vector<8x128xf32>
    %cst_43 = arith.constant 1.000000e+00 : f32
    %152 = vector.broadcast %cst_43 : f32 to vector<8x128xf32>
    %153 = arith.addf %152, %151 : vector<8x128xf32>
    %154 = arith.divf %152, %153 : vector<8x128xf32>
    %155 = vector.extract_strided_slice %154 {offsets = [0, 0], sizes = [8, 64], strides = [1, 1]} : vector<8x128xf32> to vector<8x64xf32>
    %156 = vector.extract_strided_slice %154 {offsets = [0, 64], sizes = [8, 64], strides = [1, 1]} : vector<8x128xf32> to vector<8x64xf32>
    %157 = vector.extract_strided_slice %147 {offsets = [0, 128], sizes = [8, 64], strides = [1, 1]} : vector<8x256xf32> to vector<8x64xf32>
    %158 = arith.addf %157, %16 : vector<8x64xf32>
    %159 = vector.extract_strided_slice %147 {offsets = [0, 192], sizes = [8, 64], strides = [1, 1]} : vector<8x256xf32> to vector<8x64xf32>
    %160 = arith.addf %159, %19 : vector<8x64xf32>
    %161 = arith.mulf %155, %160 : vector<8x64xf32>
    %162 = arith.addf %158, %161 : vector<8x64xf32>
    %163 = math.tanh %162 : vector<8x64xf32>
    %cst_44 = arith.constant 1.000000e+00 : f32
    %164 = vector.broadcast %cst_44 : f32 to vector<8x64xf32>
    %165 = arith.subf %164, %156 : vector<8x64xf32>
    %166 = arith.mulf %165, %163 : vector<8x64xf32>
    %167 = arith.mulf %156, %119 : vector<8x64xf32>
    %168 = arith.addf %166, %167 : vector<8x64xf32>
    %169 = arith.truncf %143 : vector<8x64xf32> to vector<8x64xbf16>
    %c0_45 = arith.constant 0 : index
    %c0_46 = arith.constant 0 : index
    %170 = vector.load %arg2[%c0_45, %c0_46] : memref<64x192xbf16, #tpu.memory_space<vmem>>, vector<64x192xbf16>
    %cst_47 = arith.constant dense<0.000000e+00> : vector<8x192xf32>
    %171 = tpu.matmul %169, %170, %cst_47 {dimension_numbers = #tpu.dot_dimension_numbers<[1], [0], [0], [1], [0, 0, 1, 1], [], []>} : vector<8x64xbf16>, vector<64x192xbf16>, vector<8x192xf32> -> vector<8x192xf32>
    %172 = vector.extract_strided_slice %6 {offsets = [24, 0], sizes = [8, 128], strides = [1, 1]} : vector<64x128xf32> to vector<8x128xf32>
    %173 = vector.extract_strided_slice %171 {offsets = [0, 0], sizes = [8, 128], strides = [1, 1]} : vector<8x192xf32> to vector<8x128xf32>
    %174 = arith.addf %172, %173 : vector<8x128xf32>
    %175 = arith.negf %174 : vector<8x128xf32>
    %176 = math.exp %175 : vector<8x128xf32>
    %cst_48 = arith.constant 1.000000e+00 : f32
    %177 = vector.broadcast %cst_48 : f32 to vector<8x128xf32>
    %178 = arith.addf %177, %176 : vector<8x128xf32>
    %179 = arith.divf %177, %178 : vector<8x128xf32>
    %180 = vector.extract_strided_slice %179 {offsets = [0, 0], sizes = [8, 64], strides = [1, 1]} : vector<8x128xf32> to vector<8x64xf32>
    %181 = vector.extract_strided_slice %179 {offsets = [0, 64], sizes = [8, 64], strides = [1, 1]} : vector<8x128xf32> to vector<8x64xf32>
    %182 = vector.extract_strided_slice %7 {offsets = [24, 0], sizes = [8, 64], strides = [1, 1]} : vector<64x64xf32> to vector<8x64xf32>
    %183 = vector.extract_strided_slice %171 {offsets = [0, 128], sizes = [8, 64], strides = [1, 1]} : vector<8x192xf32> to vector<8x64xf32>
    %184 = arith.addf %183, %10 : vector<8x64xf32>
    %185 = arith.mulf %180, %184 : vector<8x64xf32>
    %186 = arith.addf %182, %185 : vector<8x64xf32>
    %187 = math.tanh %186 : vector<8x64xf32>
    %cst_49 = arith.constant 1.000000e+00 : f32
    %188 = vector.broadcast %cst_49 : f32 to vector<8x64xf32>
    %189 = arith.subf %188, %181 : vector<8x64xf32>
    %190 = arith.mulf %189, %187 : vector<8x64xf32>
    %191 = arith.mulf %181, %143 : vector<8x64xf32>
    %192 = arith.addf %190, %191 : vector<8x64xf32>
    %193 = tpu.concatenate %168, %192 in 1 : vector<8x64xf32>, vector<8x64xf32> -> vector<8x128xf32>
    %194 = arith.truncf %193 : vector<8x128xf32> to vector<8x128xbf16>
    %c0_50 = arith.constant 0 : index
    %c0_51 = arith.constant 0 : index
    %195 = vector.load %arg5[%c0_50, %c0_51] : memref<128x256xbf16, #tpu.memory_space<vmem>>, vector<128x256xbf16>
    %cst_52 = arith.constant dense<0.000000e+00> : vector<8x256xf32>
    %196 = tpu.matmul %194, %195, %cst_52 {dimension_numbers = #tpu.dot_dimension_numbers<[1], [0], [0], [1], [0, 0, 1, 1], [], []>} : vector<8x128xbf16>, vector<128x256xbf16>, vector<8x256xf32> -> vector<8x256xf32>
    %197 = vector.extract_strided_slice %196 {offsets = [0, 0], sizes = [8, 128], strides = [1, 1]} : vector<8x256xf32> to vector<8x128xf32>
    %198 = arith.addf %197, %13 : vector<8x128xf32>
    %199 = arith.negf %198 : vector<8x128xf32>
    %200 = math.exp %199 : vector<8x128xf32>
    %cst_53 = arith.constant 1.000000e+00 : f32
    %201 = vector.broadcast %cst_53 : f32 to vector<8x128xf32>
    %202 = arith.addf %201, %200 : vector<8x128xf32>
    %203 = arith.divf %201, %202 : vector<8x128xf32>
    %204 = vector.extract_strided_slice %203 {offsets = [0, 0], sizes = [8, 64], strides = [1, 1]} : vector<8x128xf32> to vector<8x64xf32>
    %205 = vector.extract_strided_slice %203 {offsets = [0, 64], sizes = [8, 64], strides = [1, 1]} : vector<8x128xf32> to vector<8x64xf32>
    %206 = vector.extract_strided_slice %196 {offsets = [0, 128], sizes = [8, 64], strides = [1, 1]} : vector<8x256xf32> to vector<8x64xf32>
    %207 = arith.addf %206, %16 : vector<8x64xf32>
    %208 = vector.extract_strided_slice %196 {offsets = [0, 192], sizes = [8, 64], strides = [1, 1]} : vector<8x256xf32> to vector<8x64xf32>
    %209 = arith.addf %208, %19 : vector<8x64xf32>
    %210 = arith.mulf %204, %209 : vector<8x64xf32>
    %211 = arith.addf %207, %210 : vector<8x64xf32>
    %212 = math.tanh %211 : vector<8x64xf32>
    %cst_54 = arith.constant 1.000000e+00 : f32
    %213 = vector.broadcast %cst_54 : f32 to vector<8x64xf32>
    %214 = arith.subf %213, %205 : vector<8x64xf32>
    %215 = arith.mulf %214, %212 : vector<8x64xf32>
    %216 = arith.mulf %205, %168 : vector<8x64xf32>
    %217 = arith.addf %215, %216 : vector<8x64xf32>
    %218 = arith.truncf %192 : vector<8x64xf32> to vector<8x64xbf16>
    %c0_55 = arith.constant 0 : index
    %c0_56 = arith.constant 0 : index
    %219 = vector.load %arg2[%c0_55, %c0_56] : memref<64x192xbf16, #tpu.memory_space<vmem>>, vector<64x192xbf16>
    %cst_57 = arith.constant dense<0.000000e+00> : vector<8x192xf32>
    %220 = tpu.matmul %218, %219, %cst_57 {dimension_numbers = #tpu.dot_dimension_numbers<[1], [0], [0], [1], [0, 0, 1, 1], [], []>} : vector<8x64xbf16>, vector<64x192xbf16>, vector<8x192xf32> -> vector<8x192xf32>
    %221 = vector.extract_strided_slice %6 {offsets = [32, 0], sizes = [8, 128], strides = [1, 1]} : vector<64x128xf32> to vector<8x128xf32>
    %222 = vector.extract_strided_slice %220 {offsets = [0, 0], sizes = [8, 128], strides = [1, 1]} : vector<8x192xf32> to vector<8x128xf32>
    %223 = arith.addf %221, %222 : vector<8x128xf32>
    %224 = arith.negf %223 : vector<8x128xf32>
    %225 = math.exp %224 : vector<8x128xf32>
    %cst_58 = arith.constant 1.000000e+00 : f32
    %226 = vector.broadcast %cst_58 : f32 to vector<8x128xf32>
    %227 = arith.addf %226, %225 : vector<8x128xf32>
    %228 = arith.divf %226, %227 : vector<8x128xf32>
    %229 = vector.extract_strided_slice %228 {offsets = [0, 0], sizes = [8, 64], strides = [1, 1]} : vector<8x128xf32> to vector<8x64xf32>
    %230 = vector.extract_strided_slice %228 {offsets = [0, 64], sizes = [8, 64], strides = [1, 1]} : vector<8x128xf32> to vector<8x64xf32>
    %231 = vector.extract_strided_slice %7 {offsets = [32, 0], sizes = [8, 64], strides = [1, 1]} : vector<64x64xf32> to vector<8x64xf32>
    %232 = vector.extract_strided_slice %220 {offsets = [0, 128], sizes = [8, 64], strides = [1, 1]} : vector<8x192xf32> to vector<8x64xf32>
    %233 = arith.addf %232, %10 : vector<8x64xf32>
    %234 = arith.mulf %229, %233 : vector<8x64xf32>
    %235 = arith.addf %231, %234 : vector<8x64xf32>
    %236 = math.tanh %235 : vector<8x64xf32>
    %cst_59 = arith.constant 1.000000e+00 : f32
    %237 = vector.broadcast %cst_59 : f32 to vector<8x64xf32>
    %238 = arith.subf %237, %230 : vector<8x64xf32>
    %239 = arith.mulf %238, %236 : vector<8x64xf32>
    %240 = arith.mulf %230, %192 : vector<8x64xf32>
    %241 = arith.addf %239, %240 : vector<8x64xf32>
    %242 = tpu.concatenate %217, %241 in 1 : vector<8x64xf32>, vector<8x64xf32> -> vector<8x128xf32>
    %243 = arith.truncf %242 : vector<8x128xf32> to vector<8x128xbf16>
    %c0_60 = arith.constant 0 : index
    %c0_61 = arith.constant 0 : index
    %244 = vector.load %arg5[%c0_60, %c0_61] : memref<128x256xbf16, #tpu.memory_space<vmem>>, vector<128x256xbf16>
    %cst_62 = arith.constant dense<0.000000e+00> : vector<8x256xf32>
    %245 = tpu.matmul %243, %244, %cst_62 {dimension_numbers = #tpu.dot_dimension_numbers<[1], [0], [0], [1], [0, 0, 1, 1], [], []>} : vector<8x128xbf16>, vector<128x256xbf16>, vector<8x256xf32> -> vector<8x256xf32>
    %246 = vector.extract_strided_slice %245 {offsets = [0, 0], sizes = [8, 128], strides = [1, 1]} : vector<8x256xf32> to vector<8x128xf32>
    %247 = arith.addf %246, %13 : vector<8x128xf32>
    %248 = arith.negf %247 : vector<8x128xf32>
    %249 = math.exp %248 : vector<8x128xf32>
    %cst_63 = arith.constant 1.000000e+00 : f32
    %250 = vector.broadcast %cst_63 : f32 to vector<8x128xf32>
    %251 = arith.addf %250, %249 : vector<8x128xf32>
    %252 = arith.divf %250, %251 : vector<8x128xf32>
    %253 = vector.extract_strided_slice %252 {offsets = [0, 0], sizes = [8, 64], strides = [1, 1]} : vector<8x128xf32> to vector<8x64xf32>
    %254 = vector.extract_strided_slice %252 {offsets = [0, 64], sizes = [8, 64], strides = [1, 1]} : vector<8x128xf32> to vector<8x64xf32>
    %255 = vector.extract_strided_slice %245 {offsets = [0, 128], sizes = [8, 64], strides = [1, 1]} : vector<8x256xf32> to vector<8x64xf32>
    %256 = arith.addf %255, %16 : vector<8x64xf32>
    %257 = vector.extract_strided_slice %245 {offsets = [0, 192], sizes = [8, 64], strides = [1, 1]} : vector<8x256xf32> to vector<8x64xf32>
    %258 = arith.addf %257, %19 : vector<8x64xf32>
    %259 = arith.mulf %253, %258 : vector<8x64xf32>
    %260 = arith.addf %256, %259 : vector<8x64xf32>
    %261 = math.tanh %260 : vector<8x64xf32>
    %cst_64 = arith.constant 1.000000e+00 : f32
    %262 = vector.broadcast %cst_64 : f32 to vector<8x64xf32>
    %263 = arith.subf %262, %254 : vector<8x64xf32>
    %264 = arith.mulf %263, %261 : vector<8x64xf32>
    %265 = arith.mulf %254, %217 : vector<8x64xf32>
    %266 = arith.addf %264, %265 : vector<8x64xf32>
    %267 = arith.truncf %241 : vector<8x64xf32> to vector<8x64xbf16>
    %c0_65 = arith.constant 0 : index
    %c0_66 = arith.constant 0 : index
    %268 = vector.load %arg2[%c0_65, %c0_66] : memref<64x192xbf16, #tpu.memory_space<vmem>>, vector<64x192xbf16>
    %cst_67 = arith.constant dense<0.000000e+00> : vector<8x192xf32>
    %269 = tpu.matmul %267, %268, %cst_67 {dimension_numbers = #tpu.dot_dimension_numbers<[1], [0], [0], [1], [0, 0, 1, 1], [], []>} : vector<8x64xbf16>, vector<64x192xbf16>, vector<8x192xf32> -> vector<8x192xf32>
    %270 = vector.extract_strided_slice %6 {offsets = [40, 0], sizes = [8, 128], strides = [1, 1]} : vector<64x128xf32> to vector<8x128xf32>
    %271 = vector.extract_strided_slice %269 {offsets = [0, 0], sizes = [8, 128], strides = [1, 1]} : vector<8x192xf32> to vector<8x128xf32>
    %272 = arith.addf %270, %271 : vector<8x128xf32>
    %273 = arith.negf %272 : vector<8x128xf32>
    %274 = math.exp %273 : vector<8x128xf32>
    %cst_68 = arith.constant 1.000000e+00 : f32
    %275 = vector.broadcast %cst_68 : f32 to vector<8x128xf32>
    %276 = arith.addf %275, %274 : vector<8x128xf32>
    %277 = arith.divf %275, %276 : vector<8x128xf32>
    %278 = vector.extract_strided_slice %277 {offsets = [0, 0], sizes = [8, 64], strides = [1, 1]} : vector<8x128xf32> to vector<8x64xf32>
    %279 = vector.extract_strided_slice %277 {offsets = [0, 64], sizes = [8, 64], strides = [1, 1]} : vector<8x128xf32> to vector<8x64xf32>
    %280 = vector.extract_strided_slice %7 {offsets = [40, 0], sizes = [8, 64], strides = [1, 1]} : vector<64x64xf32> to vector<8x64xf32>
    %281 = vector.extract_strided_slice %269 {offsets = [0, 128], sizes = [8, 64], strides = [1, 1]} : vector<8x192xf32> to vector<8x64xf32>
    %282 = arith.addf %281, %10 : vector<8x64xf32>
    %283 = arith.mulf %278, %282 : vector<8x64xf32>
    %284 = arith.addf %280, %283 : vector<8x64xf32>
    %285 = math.tanh %284 : vector<8x64xf32>
    %cst_69 = arith.constant 1.000000e+00 : f32
    %286 = vector.broadcast %cst_69 : f32 to vector<8x64xf32>
    %287 = arith.subf %286, %279 : vector<8x64xf32>
    %288 = arith.mulf %287, %285 : vector<8x64xf32>
    %289 = arith.mulf %279, %241 : vector<8x64xf32>
    %290 = arith.addf %288, %289 : vector<8x64xf32>
    %291 = tpu.concatenate %266, %290 in 1 : vector<8x64xf32>, vector<8x64xf32> -> vector<8x128xf32>
    %292 = arith.truncf %291 : vector<8x128xf32> to vector<8x128xbf16>
    %c0_70 = arith.constant 0 : index
    %c0_71 = arith.constant 0 : index
    %293 = vector.load %arg5[%c0_70, %c0_71] : memref<128x256xbf16, #tpu.memory_space<vmem>>, vector<128x256xbf16>
    %cst_72 = arith.constant dense<0.000000e+00> : vector<8x256xf32>
    %294 = tpu.matmul %292, %293, %cst_72 {dimension_numbers = #tpu.dot_dimension_numbers<[1], [0], [0], [1], [0, 0, 1, 1], [], []>} : vector<8x128xbf16>, vector<128x256xbf16>, vector<8x256xf32> -> vector<8x256xf32>
    %295 = vector.extract_strided_slice %294 {offsets = [0, 0], sizes = [8, 128], strides = [1, 1]} : vector<8x256xf32> to vector<8x128xf32>
    %296 = arith.addf %295, %13 : vector<8x128xf32>
    %297 = arith.negf %296 : vector<8x128xf32>
    %298 = math.exp %297 : vector<8x128xf32>
    %cst_73 = arith.constant 1.000000e+00 : f32
    %299 = vector.broadcast %cst_73 : f32 to vector<8x128xf32>
    %300 = arith.addf %299, %298 : vector<8x128xf32>
    %301 = arith.divf %299, %300 : vector<8x128xf32>
    %302 = vector.extract_strided_slice %301 {offsets = [0, 0], sizes = [8, 64], strides = [1, 1]} : vector<8x128xf32> to vector<8x64xf32>
    %303 = vector.extract_strided_slice %301 {offsets = [0, 64], sizes = [8, 64], strides = [1, 1]} : vector<8x128xf32> to vector<8x64xf32>
    %304 = vector.extract_strided_slice %294 {offsets = [0, 128], sizes = [8, 64], strides = [1, 1]} : vector<8x256xf32> to vector<8x64xf32>
    %305 = arith.addf %304, %16 : vector<8x64xf32>
    %306 = vector.extract_strided_slice %294 {offsets = [0, 192], sizes = [8, 64], strides = [1, 1]} : vector<8x256xf32> to vector<8x64xf32>
    %307 = arith.addf %306, %19 : vector<8x64xf32>
    %308 = arith.mulf %302, %307 : vector<8x64xf32>
    %309 = arith.addf %305, %308 : vector<8x64xf32>
    %310 = math.tanh %309 : vector<8x64xf32>
    %cst_74 = arith.constant 1.000000e+00 : f32
    %311 = vector.broadcast %cst_74 : f32 to vector<8x64xf32>
    %312 = arith.subf %311, %303 : vector<8x64xf32>
    %313 = arith.mulf %312, %310 : vector<8x64xf32>
    %314 = arith.mulf %303, %266 : vector<8x64xf32>
    %315 = arith.addf %313, %314 : vector<8x64xf32>
    %316 = arith.truncf %290 : vector<8x64xf32> to vector<8x64xbf16>
    %c0_75 = arith.constant 0 : index
    %c0_76 = arith.constant 0 : index
    %317 = vector.load %arg2[%c0_75, %c0_76] : memref<64x192xbf16, #tpu.memory_space<vmem>>, vector<64x192xbf16>
    %cst_77 = arith.constant dense<0.000000e+00> : vector<8x192xf32>
    %318 = tpu.matmul %316, %317, %cst_77 {dimension_numbers = #tpu.dot_dimension_numbers<[1], [0], [0], [1], [0, 0, 1, 1], [], []>} : vector<8x64xbf16>, vector<64x192xbf16>, vector<8x192xf32> -> vector<8x192xf32>
    %319 = vector.extract_strided_slice %6 {offsets = [48, 0], sizes = [8, 128], strides = [1, 1]} : vector<64x128xf32> to vector<8x128xf32>
    %320 = vector.extract_strided_slice %318 {offsets = [0, 0], sizes = [8, 128], strides = [1, 1]} : vector<8x192xf32> to vector<8x128xf32>
    %321 = arith.addf %319, %320 : vector<8x128xf32>
    %322 = arith.negf %321 : vector<8x128xf32>
    %323 = math.exp %322 : vector<8x128xf32>
    %cst_78 = arith.constant 1.000000e+00 : f32
    %324 = vector.broadcast %cst_78 : f32 to vector<8x128xf32>
    %325 = arith.addf %324, %323 : vector<8x128xf32>
    %326 = arith.divf %324, %325 : vector<8x128xf32>
    %327 = vector.extract_strided_slice %326 {offsets = [0, 0], sizes = [8, 64], strides = [1, 1]} : vector<8x128xf32> to vector<8x64xf32>
    %328 = vector.extract_strided_slice %326 {offsets = [0, 64], sizes = [8, 64], strides = [1, 1]} : vector<8x128xf32> to vector<8x64xf32>
    %329 = vector.extract_strided_slice %7 {offsets = [48, 0], sizes = [8, 64], strides = [1, 1]} : vector<64x64xf32> to vector<8x64xf32>
    %330 = vector.extract_strided_slice %318 {offsets = [0, 128], sizes = [8, 64], strides = [1, 1]} : vector<8x192xf32> to vector<8x64xf32>
    %331 = arith.addf %330, %10 : vector<8x64xf32>
    %332 = arith.mulf %327, %331 : vector<8x64xf32>
    %333 = arith.addf %329, %332 : vector<8x64xf32>
    %334 = math.tanh %333 : vector<8x64xf32>
    %cst_79 = arith.constant 1.000000e+00 : f32
    %335 = vector.broadcast %cst_79 : f32 to vector<8x64xf32>
    %336 = arith.subf %335, %328 : vector<8x64xf32>
    %337 = arith.mulf %336, %334 : vector<8x64xf32>
    %338 = arith.mulf %328, %290 : vector<8x64xf32>
    %339 = arith.addf %337, %338 : vector<8x64xf32>
    %340 = tpu.concatenate %315, %339 in 1 : vector<8x64xf32>, vector<8x64xf32> -> vector<8x128xf32>
    %341 = arith.truncf %340 : vector<8x128xf32> to vector<8x128xbf16>
    %c0_80 = arith.constant 0 : index
    %c0_81 = arith.constant 0 : index
    %342 = vector.load %arg5[%c0_80, %c0_81] : memref<128x256xbf16, #tpu.memory_space<vmem>>, vector<128x256xbf16>
    %cst_82 = arith.constant dense<0.000000e+00> : vector<8x256xf32>
    %343 = tpu.matmul %341, %342, %cst_82 {dimension_numbers = #tpu.dot_dimension_numbers<[1], [0], [0], [1], [0, 0, 1, 1], [], []>} : vector<8x128xbf16>, vector<128x256xbf16>, vector<8x256xf32> -> vector<8x256xf32>
    %344 = vector.extract_strided_slice %343 {offsets = [0, 0], sizes = [8, 128], strides = [1, 1]} : vector<8x256xf32> to vector<8x128xf32>
    %345 = arith.addf %344, %13 : vector<8x128xf32>
    %346 = arith.negf %345 : vector<8x128xf32>
    %347 = math.exp %346 : vector<8x128xf32>
    %cst_83 = arith.constant 1.000000e+00 : f32
    %348 = vector.broadcast %cst_83 : f32 to vector<8x128xf32>
    %349 = arith.addf %348, %347 : vector<8x128xf32>
    %350 = arith.divf %348, %349 : vector<8x128xf32>
    %351 = vector.extract_strided_slice %350 {offsets = [0, 0], sizes = [8, 64], strides = [1, 1]} : vector<8x128xf32> to vector<8x64xf32>
    %352 = vector.extract_strided_slice %350 {offsets = [0, 64], sizes = [8, 64], strides = [1, 1]} : vector<8x128xf32> to vector<8x64xf32>
    %353 = vector.extract_strided_slice %343 {offsets = [0, 128], sizes = [8, 64], strides = [1, 1]} : vector<8x256xf32> to vector<8x64xf32>
    %354 = arith.addf %353, %16 : vector<8x64xf32>
    %355 = vector.extract_strided_slice %343 {offsets = [0, 192], sizes = [8, 64], strides = [1, 1]} : vector<8x256xf32> to vector<8x64xf32>
    %356 = arith.addf %355, %19 : vector<8x64xf32>
    %357 = arith.mulf %351, %356 : vector<8x64xf32>
    %358 = arith.addf %354, %357 : vector<8x64xf32>
    %359 = math.tanh %358 : vector<8x64xf32>
    %cst_84 = arith.constant 1.000000e+00 : f32
    %360 = vector.broadcast %cst_84 : f32 to vector<8x64xf32>
    %361 = arith.subf %360, %352 : vector<8x64xf32>
    %362 = arith.mulf %361, %359 : vector<8x64xf32>
    %363 = arith.mulf %352, %315 : vector<8x64xf32>
    %364 = arith.addf %362, %363 : vector<8x64xf32>
    %365 = arith.truncf %339 : vector<8x64xf32> to vector<8x64xbf16>
    %c0_85 = arith.constant 0 : index
    %c0_86 = arith.constant 0 : index
    %366 = vector.load %arg2[%c0_85, %c0_86] : memref<64x192xbf16, #tpu.memory_space<vmem>>, vector<64x192xbf16>
    %cst_87 = arith.constant dense<0.000000e+00> : vector<8x192xf32>
    %367 = tpu.matmul %365, %366, %cst_87 {dimension_numbers = #tpu.dot_dimension_numbers<[1], [0], [0], [1], [0, 0, 1, 1], [], []>} : vector<8x64xbf16>, vector<64x192xbf16>, vector<8x192xf32> -> vector<8x192xf32>
    %368 = vector.extract_strided_slice %6 {offsets = [56, 0], sizes = [8, 128], strides = [1, 1]} : vector<64x128xf32> to vector<8x128xf32>
    %369 = vector.extract_strided_slice %367 {offsets = [0, 0], sizes = [8, 128], strides = [1, 1]} : vector<8x192xf32> to vector<8x128xf32>
    %370 = arith.addf %368, %369 : vector<8x128xf32>
    %371 = arith.negf %370 : vector<8x128xf32>
    %372 = math.exp %371 : vector<8x128xf32>
    %cst_88 = arith.constant 1.000000e+00 : f32
    %373 = vector.broadcast %cst_88 : f32 to vector<8x128xf32>
    %374 = arith.addf %373, %372 : vector<8x128xf32>
    %375 = arith.divf %373, %374 : vector<8x128xf32>
    %376 = vector.extract_strided_slice %375 {offsets = [0, 0], sizes = [8, 64], strides = [1, 1]} : vector<8x128xf32> to vector<8x64xf32>
    %377 = vector.extract_strided_slice %375 {offsets = [0, 64], sizes = [8, 64], strides = [1, 1]} : vector<8x128xf32> to vector<8x64xf32>
    %378 = vector.extract_strided_slice %7 {offsets = [56, 0], sizes = [8, 64], strides = [1, 1]} : vector<64x64xf32> to vector<8x64xf32>
    %379 = vector.extract_strided_slice %367 {offsets = [0, 128], sizes = [8, 64], strides = [1, 1]} : vector<8x192xf32> to vector<8x64xf32>
    %380 = arith.addf %379, %10 : vector<8x64xf32>
    %381 = arith.mulf %376, %380 : vector<8x64xf32>
    %382 = arith.addf %378, %381 : vector<8x64xf32>
    %383 = math.tanh %382 : vector<8x64xf32>
    %cst_89 = arith.constant 1.000000e+00 : f32
    %384 = vector.broadcast %cst_89 : f32 to vector<8x64xf32>
    %385 = arith.subf %384, %377 : vector<8x64xf32>
    %386 = arith.mulf %385, %383 : vector<8x64xf32>
    %387 = arith.mulf %377, %339 : vector<8x64xf32>
    %388 = arith.addf %386, %387 : vector<8x64xf32>
    %389 = tpu.concatenate %364, %388 in 1 : vector<8x64xf32>, vector<8x64xf32> -> vector<8x128xf32>
    %390 = arith.truncf %389 : vector<8x128xf32> to vector<8x128xbf16>
    %c0_90 = arith.constant 0 : index
    %c0_91 = arith.constant 0 : index
    %391 = vector.load %arg5[%c0_90, %c0_91] : memref<128x256xbf16, #tpu.memory_space<vmem>>, vector<128x256xbf16>
    %cst_92 = arith.constant dense<0.000000e+00> : vector<8x256xf32>
    %392 = tpu.matmul %390, %391, %cst_92 {dimension_numbers = #tpu.dot_dimension_numbers<[1], [0], [0], [1], [0, 0, 1, 1], [], []>} : vector<8x128xbf16>, vector<128x256xbf16>, vector<8x256xf32> -> vector<8x256xf32>
    %393 = vector.extract_strided_slice %392 {offsets = [0, 0], sizes = [8, 128], strides = [1, 1]} : vector<8x256xf32> to vector<8x128xf32>
    %394 = arith.addf %393, %13 : vector<8x128xf32>
    %395 = arith.negf %394 : vector<8x128xf32>
    %396 = math.exp %395 : vector<8x128xf32>
    %cst_93 = arith.constant 1.000000e+00 : f32
    %397 = vector.broadcast %cst_93 : f32 to vector<8x128xf32>
    %398 = arith.addf %397, %396 : vector<8x128xf32>
    %399 = arith.divf %397, %398 : vector<8x128xf32>
    %400 = vector.extract_strided_slice %399 {offsets = [0, 0], sizes = [8, 64], strides = [1, 1]} : vector<8x128xf32> to vector<8x64xf32>
    %401 = vector.extract_strided_slice %399 {offsets = [0, 64], sizes = [8, 64], strides = [1, 1]} : vector<8x128xf32> to vector<8x64xf32>
    %402 = vector.extract_strided_slice %392 {offsets = [0, 128], sizes = [8, 64], strides = [1, 1]} : vector<8x256xf32> to vector<8x64xf32>
    %403 = arith.addf %402, %16 : vector<8x64xf32>
    %404 = vector.extract_strided_slice %392 {offsets = [0, 192], sizes = [8, 64], strides = [1, 1]} : vector<8x256xf32> to vector<8x64xf32>
    %405 = arith.addf %404, %19 : vector<8x64xf32>
    %406 = arith.mulf %400, %405 : vector<8x64xf32>
    %407 = arith.addf %403, %406 : vector<8x64xf32>
    %408 = math.tanh %407 : vector<8x64xf32>
    %cst_94 = arith.constant 1.000000e+00 : f32
    %409 = vector.broadcast %cst_94 : f32 to vector<8x64xf32>
    %410 = arith.subf %409, %401 : vector<8x64xf32>
    %411 = arith.mulf %410, %408 : vector<8x64xf32>
    %412 = arith.mulf %401, %364 : vector<8x64xf32>
    %413 = arith.addf %411, %412 : vector<8x64xf32>
    %c0_95 = arith.constant 0 : index
    %c0_96 = arith.constant 0 : index
    %414 = vector.load %arg9[%c0_95, %c0_96] : memref<1x64xf32, #tpu.memory_space<vmem>>, vector<1x64xf32>
    %415 = vector.broadcast %414 : vector<1x64xf32> to vector<8x64xf32>
    %416 = arith.mulf %413, %415 : vector<8x64xf32>
    %cst_97 = arith.constant dense<0.000000e+00> : vector<8xf32>
    %417 = vector.multi_reduction <add>, %416, %cst_97 [1] : vector<8x64xf32> to vector<8xf32>
    %418 = vector.shape_cast %417 : vector<8xf32> to vector<8x1xf32>
    %c0_98 = arith.constant 0 : index
    %c0_99 = arith.constant 0 : index
    %419 = vector.load %arg10[%c0_98, %c0_99] : memref<1x1xf32, #tpu.memory_space<vmem>>, vector<1x1xf32>
    %420 = vector.broadcast %419 : vector<1x1xf32> to vector<8x1xf32>
    %421 = arith.addf %418, %420 : vector<8x1xf32>
    %c0_100 = arith.constant 0 : index
    %c0_101 = arith.constant 0 : index
    %422 = vector.load %arg11[%c0_100, %c0_101] : memref<8x1xf32, #tpu.memory_space<vmem>>, vector<8x1xf32>
    tpu.vector_store %arg11[%c0_100, %c0_101], %421 {strides = array<i32>} : memref<8x1xf32, #tpu.memory_space<vmem>>, vector<8x1xf32>,
    return
  }
}

</mosaic_0001>

<bundles_post_ra>
// kernel: tpu_custom_call.1
= control target key start
LH: loop header
LB: loop body
LE: loop exit
PB: predicated region body
PF: predicated region fallthrough
CT: control target
= control target key end

     0   :  { %s2395_s0 = inlined_call_operand.vmem [shape: bf16[64,6], index: 0, kind: input, shape index: {}]   ;;  %s2396_s1 = inlined_call_operand.vmem [shape: bf16[6,192], index: 1, kind: input, shape index: {}]   ;;  %s2397_s2 = inlined_call_operand.hbm [shape: bf16[64,192], index: 2, kind: input, shape index: {}]   ;;  %s2398_s3 = inlined_call_operand.vmem [shape: f32[1,192], index: 3, kind: input, shape index: {}]   ;;  %s2399_s4 = inlined_call_operand.vmem [shape: f32[1,64], index: 4, kind: input, shape index: {}]   ;;  %s2400_s5 = inlined_call_operand.hbm [shape: bf16[128,256], index: 5, kind: input, shape index: {}]   ;;  %s2401_s6 = inlined_call_operand.vmem [shape: f32[1,128], index: 6, kind: input, shape index: {}]   ;;  %s2402_s7 = inlined_call_operand.vmem [shape: f32[1,64], index: 7, kind: input, shape index: {}]   ;;  %s2403_s8 = inlined_call_operand.vmem [shape: f32[1,64], index: 8, kind: input, shape index: {}]   ;;  %s2404_s9 = inlined_call_operand.vmem [shape: f32[1,64], index: 9, kind: input, shape index: {}]   ;;  %s2405_s10 = inlined_call_operand.<no memory space> [shape: f32[1,1], index: 10, kind: input, shape index: {}]   ;;  %s2406_s11 = inlined_call_operand.vmem [shape: f32[8,1], index: 11, kind: output, shape index: {}]  }
   0x1   :  { %v16_v0 = vstv %s2405_s10 }
   0x2   :  { %17 = vst [vmem:[#allocation2] sm:$0x1] %v16_v0 }
   0x3   :  { %18 = vsyncpa [#allocation4], 0  ;;  %s28_s21 = sshll.u32 %s2397_s2, 4  ;;  %s29_s21 = int_to_ptr.hbm [resolvable:$true] %s28_s21 }
   0x4   :  { %19 = vsyncpa [#allocation6], 0  ;;  %s1796_s22 = smov [#allocation3]   ;;  %s45_s26 = sshll.u32 %s2400_s5, 4  ;;  %s46_s26 = int_to_ptr.hbm [resolvable:$true] %s45_s26 }
   0x5   :  { %s30_s23 = sshll.u32 %s1796_s22, 4  ;;  %s1797_s27 = smov 128   ;;  %s31_s23 = int_to_ptr.vmem [resolvable:$true] %s30_s23 }
   0x6   :  { %s1798_s28 = smov 8   ;;  %s1799_s10 = smov [#allocation5]  }
   0x7   :  { %36 = dma.hbm_to_vmem [thread:$0]  %s29_s21, 1024, %s31_s23, [#allocation4], %s1797_s27, %s1797_s27, %s1798_s28  }
   0x8   :  { %s47_s29 = sshll.u32 %s1799_s10, 4  ;;  %s48_s29 = int_to_ptr.vmem [resolvable:$true] %s47_s29 }
   0x9   :  { %53 = dma.hbm_to_vmem [thread:$0]  %s46_s26, 2048, %s48_s29, [#allocation6], %s1797_s27, %s1797_s27, %s1798_s28  }
   0xa   :  { %1792 = dma.done.wait [#allocation4], 1024  }
   0xb   :  { %1793 = vsyncadd [#allocation4], 4294966272 }
   0xc   :  { %1794 = dma.done.wait [#allocation6], 2048  }
   0xd   :  { %1795 = vsyncadd [#allocation6], 4294965248  ;;  %v1495_v1 = vld [vmem:[#allocation3 + $0x30] sm:$0xf]  ;;  %v1616_v2 = vld [vmem:[#allocation3 + $0x34] sm:$0xf0] }
   0xe   :  { %v1487_v3 = vld [vmem:[#allocation3 + $0x20] sm:$0xf]  ;;  %v1871_v4 = vor.u32 %v1616_v2, %v1495_v1  ;;  %v1614_v5 = vld [vmem:[#allocation3 + $0x24] sm:$0xf0]  ;;  %vm126_vm0 = vcmask 1042432   ;;  %vm113_vm1 = vcmask 48128  }
   0xf   :  { %v81_v6 = vld [vmem:[%s2396_s1] sm:$0x77]  ;;  %v1877_v9 = vor.u32 %v1614_v5, %v1487_v3  ;;  %v1479_v10 = vld [vmem:[#allocation3 + $0x10] sm:$0xf]  ;;  %v1615_v11 = vld [vmem:[#allocation3 + $0x34] sm:$0xf] }
  0x10   :  { %v109_v7 = vunpack.c.l.b16 %v81_v6  ;;  %v110_v8 = vunpack.c.h.b16 %v81_v6  ;;  %262 = vmatpush.bf16.msra.mxu2 %v1871_v4  ;;  %v1497_v12 = vld [vmem:[#allocation3 + $0x38] sm:$0xf0]  ;;  %v1612_v14 = vld [vmem:[#allocation3 + $0x14] sm:$0xf0]  ;;  %v1613_v16 = vld [vmem:[#allocation3 + $0x24] sm:$0xf] }
  0x11   :  { %v1879_v15 = vor.u32 %v1615_v11, %v1497_v12  ;;  %v1489_v17 = vld [vmem:[#allocation3 + $0x28] sm:$0xf0]  ;;  %v1605_v19 = vld [vmem:[%s2395_s0] sm:$0xff]  ;;  %v1610_v22 = vld [vmem:[#allocation3 + $0x4] sm:$0xf0]  ;;  %v1890_v26 = vor.u32 %v1612_v14, %v1479_v10  ;;  %v1800_v33 = vmov 0  }
  0x12   :  { %v111_v13 = vpack.c.b16 %v109_v7, %v109_v7  ;;  %v112_v18 = vpack.c.b16 %v110_v8, %v110_v8  ;;  %v1471_v21 = vld [vmem:[#allocation3] sm:$0xf]  ;;  %v1886_v23 = vor.u32 %v1613_v16, %v1489_v17  ;;  %v1611_v24 = vld [vmem:[#allocation3 + $0x14] sm:$0xf]  ;;  %v1481_v27 = vld [vmem:[#allocation3 + $0x18] sm:$0xf0] }
  0x13   :  { %275 = vmatpush.bf16.msra.mxu3 %v1879_v15  ;;  %v1894_v28 = vor.u32 %v1611_v24, %v1481_v27  ;;  %v1897_v29 = vor.u32 %v1610_v22, %v1471_v21  ;;  %v1609_v30 = vld [vmem:[#allocation3 + $0x4] sm:$0xf]  ;;  %v1473_v31 = vld [vmem:[#allocation3 + $0x8] sm:$0xf0]  ;;  %v82_v34 = vld [vmem:[%s2398_s3] sm:$0x3] }
  0x14   :  { %v128_v20 = vsel %vm126_vm0, %v111_v13, 0  ;;  %v131_v25 = vsel %vm126_vm0, %v112_v18, 0  ;;  %263 = vmatpush.bf16.msra.mxu2 %v1877_v9  ;;  %v1901_v32 = vor.u32 %v1609_v30, %v1473_v31  ;;  %v1908_v35 = vperm.slane %v82_v34, 0  ;;  %v1560_v43 = vld [vmem:[#allocation5 + $0x70] sm:$0xf]  ;;  %s1801_s15 = smov 64  }
  0x15   :  { %140 = vmatpush.bf16.msra.mxu0 %v128_v20  ;;  %169 = vmatpush.bf16.msra.mxu1 %v131_v25  ;;  %v1632_v44 = vld [vmem:[#allocation5 + $0x74] sm:$0xf0]  ;;  %v1631_v45 = vld [vmem:[#allocation5 + $0x74] sm:$0xf]  ;;  %v1562_v49 = vld [vmem:[#allocation5 + $0x78] sm:$0xf0] }
  0x16   :  { %v1913_v48 = vor.u32 %v1632_v44, %v1560_v43  ;;  %v1552_v50 = vld [vmem:[#allocation5 + $0x60] sm:$0xf]  ;;  %v1630_v51 = vld [vmem:[#allocation5 + $0x64] sm:$0xf0]  ;;  %v1915_v53 = vor.u32 %v1631_v45, %v1562_v49  ;;  %v1629_v54 = vld [vmem:[#allocation5 + $0x64] sm:$0xf] }
  0x17   :  { %276 = vmatpush.bf16.msra.mxu3 %v1886_v23  ;;  %v1554_v55 = vld [vmem:[#allocation5 + $0x68] sm:$0xf0]  ;;  %v1918_v56 = vor.u32 %v1630_v51, %v1552_v50  ;;  %v1544_v58 = vld [vmem:[#allocation5 + $0x50] sm:$0xf]  ;;  %v1628_v59 = vld [vmem:[#allocation5 + $0x54] sm:$0xf0] }
  0x18   :  { %1461 = vmatmul.msk.bf16.vlgmr.msra.gmra.mxu0 %vm113_vm1, %v1605_v19  ;;  %264 = vmatpush.bf16.msra.mxu2 %v1890_v26  ;;  %v1922_v57 = vor.u32 %v1629_v54, %v1554_v55  ;;  %v1627_v60 = vld [vmem:[#allocation5 + $0x54] sm:$0xf]  ;;  %v1546_v61 = vld [vmem:[#allocation5 + $0x58] sm:$0xf0]  ;;  %v1926_v62 = vor.u32 %v1628_v59, %v1544_v58  ;;  %v1536_v0 = vld [vmem:[#allocation5 + $0x40] sm:$0xf] }
  0x19   :  { %1465 = vmatmul.msk.bf16.vlgmr.msra.gmra.mxu1 %vm113_vm1, %v1605_v19  ;;  %551 = vmatpush.bf16.msrb.mxu0 %v1913_v48  ;;  %v1930_v63 = vor.u32 %v1627_v60, %v1546_v61  ;;  %v1626_v1 = vld [vmem:[#allocation5 + $0x44] sm:$0xf0]  ;;  %v1625_v2 = vld [vmem:[#allocation5 + $0x44] sm:$0xf]  ;;  %v1538_v3 = vld [vmem:[#allocation5 + $0x48] sm:$0xf0] }
  0x1a   :  { %564 = vmatpush.bf16.msrb.mxu1 %v1915_v53  ;;  %v1934_v7 = vor.u32 %v1626_v1, %v1536_v0  ;;  %v1940_v8 = vld [vmem:[%s2399_s4] ss:$0 sm:$0xff]  ;;  %v1943_v10 = vor.u32 %v1625_v2, %v1538_v3  ;;  %v1528_v11 = vld [vmem:[#allocation5 + $0x30] sm:$0xf]  ;;  %v1624_v12 = vld [vmem:[#allocation5 + $0x34] sm:$0xf0] }
  0x1b   :  { %277 = vmatpush.bf16.msra.mxu3 %v1894_v28  ;;  %v1623_v14 = vld [vmem:[#allocation5 + $0x34] sm:$0xf]  ;;  %v1530_v16 = vld [vmem:[#allocation5 + $0x38] sm:$0xf0]  ;;  %v1946_v18 = vperm.slane %v82_v34, 1  ;;  %v1949_v21 = vor.u32 %v1624_v12, %v1528_v11  ;;  %vm254_vm6 = vcmask 523264  }
  0x1c   :  { %265 = vmatpush.bf16.msra.mxu2 %v1897_v29  ;;  %v1953_v22 = vor.u32 %v1623_v14, %v1530_v16  ;;  %v1520_v24 = vld [vmem:[#allocation5 + $0x20] sm:$0xf]  ;;  %v1622_v25 = vld [vmem:[#allocation5 + $0x24] sm:$0xf0]  ;;  %v1621_v31 = vld [vmem:[#allocation5 + $0x24] sm:$0xf] }
  0x1d   :  { %552 = vmatpush.bf16.msrb.mxu0 %v1918_v56  ;;  %v1620_v43 = vld [vmem:[#allocation5 + $0x14] sm:$0xf0]  ;;  %v1619_v45 = vld [vmem:[#allocation5 + $0x14] sm:$0xf]  ;;  %v1618_v54 = vld [vmem:[#allocation5 + $0x4] sm:$0xf0] }
  0x1e   :  { %565 = vmatpush.bf16.msrb.mxu1 %v1922_v57  ;;  %v1617_v55 = vld [vmem:[#allocation5 + $0x4] sm:$0xf]  ;;  %v1506_v59 = vld [vmem:[#allocation5 + $0x8] sm:$0xf0]  ;;  %v1640_v61 = vld [vmem:[%s2403_s8] ss:$0 sm:$0xff] }
  0x1f   :  { %266 = vmatmul.bf16.vlgmr.msra.gmra.mxu2 %v1800_v33  ;;  %278 = vmatpush.bf16.msra.mxu3 %v1901_v32  ;;  %v1983_v60 = vor.u32 %v1617_v55, %v1506_v59  ;;  %vm1566_vm7 = vmneg %vm254_vm6 }
  0x20   :  { %414 = vmatpush.bf16.msrb.mxu2 %v1913_v48  ;;  %461 = vrot.lane.b32.xlu1 %v1640_v61, %s1801_s15  ;;  %vm1568_vm8 = vmpackc.low %vm1566_vm7, %vm1566_vm7 }
  0x21   :  { %553 = vmatpush.bf16.msrb.mxu0 %v1926_v62 }
  0x22   :  { %279 = vmatmul.bf16.vlgmr.msra.gmra.mxu3 %v1800_v33  ;;  %566 = vmatpush.bf16.msrb.mxu1 %v1930_v63  ;;  %v1522_v33 = vld [vmem:[#allocation5 + $0x28] sm:$0xf0] }
  0x23   :  { %427 = vmatpush.bf16.msrb.mxu3 %v1915_v53 }
  0x24   :  { %415 = vmatpush.bf16.msrb.mxu2 %v1918_v56 }
  0x25   :  { %554 = vmatpush.bf16.msrb.mxu0 %v1934_v7 }
  0x26   :  { %567 = vmatpush.bf16.msrb.mxu1 %v1943_v10 }
  0x27   :  { %428 = vmatpush.bf16.msrb.mxu3 %v1922_v57 }
  0x28   :  { %416 = vmatpush.bf16.msrb.mxu2 %v1926_v62 }
  0x29   :  { %555 = vmatpush.bf16.msrb.mxu0 %v1949_v21 }
  0x2a   :  { %568 = vmatpush.bf16.msrb.mxu1 %v1953_v22 }
  0x2b   :  { %429 = vmatpush.bf16.msrb.mxu3 %v1930_v63 }
  0x2c   :  { %417 = vmatpush.bf16.msrb.mxu2 %v1934_v7 }
  0x2f   :  { %430 = vmatpush.bf16.msrb.mxu3 %v1943_v10 }
  0x30   :  { %418 = vmatpush.bf16.msrb.mxu2 %v1949_v21 }
  0x33   :  { %431 = vmatpush.bf16.msrb.mxu3 %v1953_v22 }
  0x92   :  { %v2033_v12 = vpop.permute.xlu1 %461 }
  0x95   :  { %v142_v36 = vpop.f32.mrf.mxu0 }
  0x96   :  { %v143_v37 = vadd.f32 %v142_v36, %v1908_v35  ;;  %v171_v36 = vpop.f32.mrf.mxu1 }
  0xa2   :  { %v267_v38 = vpop.f32.mrf.mxu2 }
  0xa3   :  { %v284_v39 = vadd.f32 %v267_v38, %v143_v37  ;;  %v172_v38 = vadd.f32 %v171_v36, %v1946_v18 }
  0xa5   :  { %v1501_v40 = vmul.f32 -1.442695, %v284_v39  ;;  %v1911_v41 = vpop.f32.mrf.mxu3  ;;  %v1961_v39 = vor.u32 %v1622_v25, %v1520_v24 }
  0xa6   :  { %v304_v30 = vadd.f32 %v1940_v8, %v1911_v41  ;;  %v1965_v41 = vor.u32 %v1621_v31, %v1522_v33 }
  0xa7   :  { %1645 = vpow2.f32 %v1501_v40  ;;  %419 = vmatpush.bf16.msrb.mxu2 %v1961_v39  ;;  %556 = vmatpush.bf16.msrb.mxu0 %v1961_v39 }
  0xa8   :  { %432 = vmatpush.bf16.msrb.mxu3 %v1965_v41  ;;  %569 = vmatpush.bf16.msrb.mxu1 %v1965_v41 }
  0xaa   :  { %v269_v42 = vpop.f32.mrf.mxu2 }
  0xab   :  { %v1512_v42 = vld [vmem:[#allocation5 + $0x10] sm:$0xf] }
  0xac   :  { %v1969_v49 = vor.u32 %v1620_v43, %v1512_v42 }
  0xad   :  { %v1646_v46 = vpop.eup %1645  ;;  %v282_v47 = vpop.f32.mrf.mxu3 }
  0xae   :  { %v288_v52 = vadd.f32 1.0, %v1646_v46  ;;  %v1514_v46 = vld [vmem:[#allocation5 + $0x18] sm:$0xf0]  ;;  %420 = vmatpush.bf16.msrb.mxu2 %v1969_v49  ;;  %557 = vmatpush.bf16.msrb.mxu0 %v1969_v49 }
  0xaf   :  { %v1973_v50 = vor.u32 %v1619_v45, %v1514_v46 }
  0xb0   :  { %1647 = vrcp.f32 %v288_v52  ;;  %v300_v17 = vand.u32 2147483648, %v288_v52  ;;  %v298_v20 = vand.u32 2147483647, %v288_v52  ;;  %vm294_vm3 = vweird.f32 %v288_v52 }
  0xb1   :  { %433 = vmatpush.bf16.msrb.mxu3 %v1973_v50  ;;  %570 = vmatpush.bf16.msrb.mxu1 %v1973_v50 }
  0xb2   :  { %v301_v34 = vor.u32 1.1754944e-38, %v300_v17  ;;  %vm299_vm5 = vcmp.eq.f32.partialorder %v298_v20, 8.507059e+37  ;;  %v2048_v20 = vld [vmem:[%s2401_s6] ss:$0 sm:$0xff] }
  0xb5   :  { %434 = vmatpush.bf16.msrb.mxu3 %v1983_v60  ;;  %571 = vmatpush.bf16.msrb.mxu1 %v1983_v60 }
  0xb6   :  { %v1648_v5 = vpop.eup %1647 }
  0xb7   :  { %v290_v6 = vmul.f32 %v1648_v5, %v288_v52  ;;  %vm295_vm2 = vweird.f32 %v1648_v5  ;;  %v1504_v52 = vld [vmem:[#allocation5] sm:$0xf] }
  0xb8   :  { %vm296_vm4 = vmor %vm294_vm3, %vm295_vm2  ;;  %v1981_v58 = vor.u32 %v1618_v54, %v1504_v52 }
  0xb9   :  { %v291_v13 = vsub.f32 1.0, %v290_v6  ;;  %504 = vmatpush.bf16.msra.mxu3 %v1879_v15  ;;  %638 = vmatpush.bf16.msra.mxu1 %v1879_v15 }
  0xba   :  { %421 = vmatpush.bf16.msrb.mxu2 %v1981_v58  ;;  %558 = vmatpush.bf16.msrb.mxu0 %v1981_v58 }
  0xbb   :  { %v292_v19 = vmul.f32 %v1648_v5, %v291_v13 }
  0xbd   :  { %v293_v27 = vadd.f32 %v1648_v5, %v292_v19  ;;  %505 = vmatpush.bf16.msra.mxu3 %v1886_v23  ;;  %639 = vmatpush.bf16.msra.mxu1 %v1886_v23 }
  0xbe   :  { %491 = vmatpush.bf16.msra.mxu2 %v1871_v4  ;;  %625 = vmatpush.bf16.msra.mxu0 %v1871_v4 }
  0xbf   :  { %v297_v37 = vsel %vm296_vm4, %v1648_v5, %v293_v27 }
  0xc0   :  { %v302_v40 = vsel %vm299_vm5, %v301_v34, %v297_v37  ;;  %v144_v37 = vpop.f32.mrf.mxu0 }
  0xc1   :  { %v305_v44 = vmul.f32 %v304_v30, %v302_v40  ;;  %506 = vmatpush.bf16.msra.mxu3 %v1894_v28  ;;  %640 = vmatpush.bf16.msra.mxu1 %v1894_v28  ;;  %v308_v0 = vsub.f32 1.0, %v302_v40  ;;  %v314_v2 = vmul.f32 0.0, %v302_v40  ;;  %v145_v43 = vadd.f32 %v144_v37, %v1908_v35 }
  0xc2   :  { %492 = vmatpush.bf16.msra.mxu2 %v1877_v9  ;;  %626 = vmatpush.bf16.msra.mxu0 %v1877_v9 }
  0xc3   :  { %v306_v47 = vadd.f32 %v305_v44, %v172_v38  ;;  %v2055_v44 = vld [vmem:[%s2402_s7] ss:$0 sm:$0xff] }
  0xc5   :  { %1649 = vtanh.f32 %v306_v47  ;;  %507 = vmatpush.bf16.msra.mxu3 %v1901_v32  ;;  %641 = vmatpush.bf16.msra.mxu1 %v1901_v32 }
  0xc6   :  { %493 = vmatpush.bf16.msra.mxu2 %v1890_v26  ;;  %627 = vmatpush.bf16.msra.mxu0 %v1890_v26 }
  0xca   :  { %494 = vmatpush.bf16.msra.mxu2 %v1897_v29  ;;  %628 = vmatpush.bf16.msra.mxu0 %v1897_v29 }
  0xcb   :  { %v1650_v51 = vpop.eup %1649 }
  0xcc   :  { %310 = vrot.lane.b32.xlu0 %v1650_v51, %s1801_s15 }
 0x13e   :  { %v311_v1 = vpop.permute.xlu0 %310 }
 0x13f   :  { %v313_v3 = vmul.f32 %v311_v1, %v308_v0 }
 0x141   :  { %v2010_v5 = vadd.f32 %v314_v2, %v313_v3 }
 0x143   :  { %v1569_v6 = vpack.c.bf16 %v2010_v5, %v2010_v5 }
 0x145   :  { %482 = vrot.lane.b32.xlu0 %v1569_v6, %s1801_s15  ;;  %1570 = vmatmul.msk.bf16.vlgmr.msrb.gmra.mxu2 %vm1568_vm8, %v1569_v6 }
 0x146   :  { %1575 = vmatmul.msk.bf16.vlgmr.msrb.gmra.mxu3 %vm1568_vm8, %v1569_v6  ;;  %759 = vmatpush.bf16.msrb.mxu2 %v1871_v4 }
 0x147   :  { %772 = vmatpush.bf16.msrb.mxu3 %v1879_v15 }
 0x14a   :  { %760 = vmatpush.bf16.msrb.mxu2 %v1877_v9 }
 0x14b   :  { %773 = vmatpush.bf16.msrb.mxu3 %v1886_v23 }
 0x14e   :  { %761 = vmatpush.bf16.msrb.mxu2 %v1890_v26 }
 0x14f   :  { %774 = vmatpush.bf16.msrb.mxu3 %v1894_v28 }
 0x152   :  { %762 = vmatpush.bf16.msrb.mxu2 %v1897_v29 }
 0x153   :  { %775 = vmatpush.bf16.msrb.mxu3 %v1901_v32 }
 0x1b7   :  { %v483_v11 = vpop.permute.xlu0 %482 }
 0x1b8   :  { %1577 = vmatmul.msk.bf16.vlgmr.msra.gmra.mxu2 %vm254_vm6, %v483_v11  ;;  %1578 = vmatmul.msk.bf16.vlgmr.msra.gmra.mxu3 %vm254_vm6, %v483_v11 }
 0x1b9   :  { %819 = vmatpush.bf16.msra.mxu2 %v1913_v48  ;;  %832 = vmatpush.bf16.msra.mxu3 %v1915_v53 }
 0x1bd   :  { %820 = vmatpush.bf16.msra.mxu2 %v1918_v56  ;;  %833 = vmatpush.bf16.msra.mxu3 %v1922_v57 }
 0x1c1   :  { %821 = vmatpush.bf16.msra.mxu2 %v1926_v62  ;;  %834 = vmatpush.bf16.msra.mxu3 %v1930_v63 }
 0x1c5   :  { %822 = vmatpush.bf16.msra.mxu2 %v1934_v7  ;;  %835 = vmatpush.bf16.msra.mxu3 %v1943_v10 }
 0x1c8   :  { %v423_v13 = vpop.f32.mrf.mxu2 }
 0x1c9   :  { %v436_v14 = vpop.f32.mrf.mxu3  ;;  %823 = vmatpush.bf16.msra.mxu2 %v1949_v21  ;;  %836 = vmatpush.bf16.msra.mxu3 %v1953_v22  ;;  %v440_v24 = vadd.f32 %v2048_v20, %v423_v13 }
 0x1ca   :  { %v464_v16 = vadd.f32 %v2033_v12, %v436_v14  ;;  %v460_v61 = vadd.f32 %v2055_v44, %v436_v14 }
 0x1cb   :  { %v1576_v25 = vmul.f32 -1.442695, %v440_v24 }
 0x1cc   :  { %466 = vrot.lane.b32.xlu1 %v464_v16, %s1801_s15 }
 0x1cd   :  { %824 = vmatpush.bf16.msra.mxu2 %v1961_v39  ;;  %837 = vmatpush.bf16.msra.mxu3 %v1965_v41  ;;  %1651 = vpow2.f32 %v1576_v25 }
 0x1d0   :  { %v425_v17 = vpop.f32.mrf.mxu2 }
 0x1d1   :  { %v438_v19 = vpop.f32.mrf.mxu3  ;;  %825 = vmatpush.bf16.msra.mxu2 %v1969_v49  ;;  %838 = vmatpush.bf16.msra.mxu3 %v1973_v50 }
 0x1d3   :  { %v1652_v27 = vpop.eup %1651 }
 0x1d4   :  { %v444_v30 = vadd.f32 1.0, %v1652_v27 }
 0x1d5   :  { %826 = vmatpush.bf16.msra.mxu2 %v1981_v58  ;;  %839 = vmatpush.bf16.msra.mxu3 %v1983_v60 }
 0x1d6   :  { %1653 = vrcp.f32 %v444_v30  ;;  %v456_v40 = vand.u32 2147483648, %v444_v30  ;;  %vm450_vm10 = vweird.f32 %v444_v30  ;;  %v454_v42 = vand.u32 2147483647, %v444_v30 }
 0x1d8   :  { %v457_v52 = vor.u32 1.1754944e-38, %v456_v40  ;;  %vm455_vm12 = vcmp.eq.f32.partialorder %v454_v42, 8.507059e+37 }
 0x1dc   :  { %v1654_v31 = vpop.eup %1653 }
 0x1dd   :  { %v446_v33 = vmul.f32 %v1654_v31, %v444_v30  ;;  %vm451_vm9 = vweird.f32 %v1654_v31  ;;  %v173_v30 = vpop.f32.mrf.mxu1 }
 0x1de   :  { %vm452_vm11 = vmor %vm450_vm10, %vm451_vm9  ;;  %v174_v37 = vadd.f32 %v173_v30, %v1946_v18 }
 0x1df   :  { %v447_v34 = vsub.f32 1.0, %v446_v33 }
 0x1e1   :  { %v448_v36 = vmul.f32 %v1654_v31, %v447_v34 }
 0x1e3   :  { %v449_v38 = vadd.f32 %v1654_v31, %v448_v36 }
 0x1e5   :  { %v453_v47 = vsel %vm452_vm11, %v1654_v31, %v449_v38 }
 0x1e6   :  { %v458_v59 = vsel %vm455_vm12, %v457_v52, %v453_v47  ;;  %v1606_v52 = vld [vmem:[%s2395_s0 + $0x8] sm:$0xff] }
 0x1e7   :  { %v478_v47 = vmul.f32 0.0, %v458_v59  ;;  %1466 = vmatmul.msk.bf16.gmra.mxu1 %vm113_vm1, %v1606_v52  ;;  %1462 = vmatmul.msk.bf16.gmra.mxu0 %vm113_vm1, %v1606_v52 }
 0x23b   :  { %v496_v45 = vpop.f32.mrf.mxu2  ;;  %v509_v46 = vpop.f32.mrf.mxu3 }
 0x23c   :  { %v513_v51 = vadd.f32 %v496_v45, %v145_v43  ;;  %v533_v34 = vadd.f32 %v1940_v8, %v509_v46  ;;  %v472_v43 = vsub.f32 1.0, %v458_v59  ;;  %v1607_v46 = vld [vmem:[%s2395_s0 + $0x10] sm:$0xff] }
 0x23d   :  { %1467 = vmatmul.msk.bf16.gmra.mxu1 %vm113_vm1, %v1607_v46  ;;  %1463 = vmatmul.msk.bf16.gmra.mxu0 %vm113_vm1, %v1607_v46 }
 0x23e   :  { %v1579_v54 = vmul.f32 -1.442695, %v513_v51  ;;  %v467_v55 = vpop.permute.xlu1 %466 }
 0x23f   :  { %v469_v0 = vmul.f32 %v467_v55, %v458_v59 }
 0x240   :  { %1655 = vpow2.f32 %v1579_v54 }
 0x241   :  { %v470_v1 = vadd.f32 %v469_v0, %v460_v61 }
 0x243   :  { %1657 = vtanh.f32 %v470_v1  ;;  %v498_v2 = vpop.f32.mrf.mxu2  ;;  %v511_v3 = vpop.f32.mrf.mxu3 }
 0x244   :  { %v1608_v3 = vld [vmem:[%s2395_s0 + $0x18] sm:$0xff] }
 0x246   :  { %v1656_v6 = vpop.eup %1655 }
 0x247   :  { %v517_v11 = vadd.f32 1.0, %v1656_v6 }
 0x249   :  { %v1658_v13 = vpop.eup %1657  ;;  %1659 = vrcp.f32 %v517_v11  ;;  %v529_v24 = vand.u32 2147483648, %v517_v11  ;;  %v527_v27 = vand.u32 2147483647, %v517_v11  ;;  %vm523_vm14 = vweird.f32 %v517_v11 }
 0x24a   :  { %474 = vrot.lane.b32.xlu2 %v1658_v13, %s1801_s15 }
 0x24b   :  { %v530_v31 = vor.u32 1.1754944e-38, %v529_v24  ;;  %vm528_vm0 = vcmp.eq.f32.partialorder %v527_v27, 8.507059e+37 }
 0x24d   :  { %1468 = vmatmul.msk.bf16.gmra.mxu1 %vm113_vm1, %v1608_v3  ;;  %1464 = vmatmul.msk.bf16.gmra.mxu0 %vm113_vm1, %v1608_v3 }
 0x24f   :  { %v1660_v16 = vpop.eup %1659 }
 0x250   :  { %v519_v17 = vmul.f32 %v1660_v16, %v517_v11  ;;  %vm524_vm13 = vweird.f32 %v1660_v16 }
 0x251   :  { %vm525_vm15 = vmor %vm523_vm14, %vm524_vm13 }
 0x252   :  { %v520_v19 = vsub.f32 1.0, %v519_v17 }
 0x254   :  { %v521_v25 = vmul.f32 %v1660_v16, %v520_v19 }
 0x256   :  { %v522_v14 = vadd.f32 %v1660_v16, %v521_v25 }
 0x258   :  { %v526_v33 = vsel %vm525_vm15, %v1660_v16, %v522_v14 }
 0x259   :  { %v531_v36 = vsel %vm528_vm0, %v530_v31, %v526_v33 }
 0x25a   :  { %v534_v38 = vmul.f32 %v533_v34, %v531_v36  ;;  %v537_v55 = vsub.f32 1.0, %v531_v36  ;;  %v543_v61 = vmul.f32 %v531_v36, %v2010_v5 }
 0x25c   :  { %v535_v40 = vadd.f32 %v534_v38, %v174_v37 }
 0x25e   :  { %1661 = vtanh.f32 %v535_v40 }
 0x264   :  { %v1662_v42 = vpop.eup %1661  ;;  %v147_v16 = vpop.f32.mrf.mxu0 }
 0x265   :  { %539 = vrot.lane.b32.xlu2 %v1662_v42, %s1801_s15  ;;  %v176_v17 = vpop.f32.mrf.mxu1 }
 0x26c   :  { %v2115_v19 = vpop.f32.mrf.mxu0 }
 0x26d   :  { %v2117_v24 = vpop.f32.mrf.mxu1 }
 0x2a4   :  { %v475_v45 = vpop.permute.xlu2 %474 }
 0x2a5   :  { %v477_v51 = vmul.f32 %v475_v45, %v472_v43  ;;  %v148_v45 = vadd.f32 %v147_v16, %v1908_v35 }
 0x2a7   :  { %v2065_v54 = vadd.f32 %v478_v47, %v477_v51 }
 0x2a9   :  { %546 = vrot.lane.b32.xlu0 %v2065_v54, %s1801_s15 }
 0x2ba   :  { %v2119_v25 = vpop.f32.mrf.mxu0  ;;  %v2121_v27 = vpop.f32.mrf.mxu1 }
 0x2bf   :  { %v540_v59 = vpop.permute.xlu2 %539 }
 0x2c0   :  { %v542_v0 = vmul.f32 %v540_v59, %v537_v55 }
 0x2c2   :  { %v2077_v1 = vadd.f32 %v543_v61, %v542_v0  ;;  %v2123_v14 = vpop.f32.mrf.mxu0  ;;  %v2125_v30 = vpop.f32.mrf.mxu1 }
 0x2c4   :  { %v614_v2 = vpack.c.bf16 %v2077_v1, %v2077_v1 }
 0x2c6   :  { %616 = vrot.lane.b32.xlu1 %v614_v2, %s1801_s15 }
 0x2ca   :  { %v2127_v31 = vpop.f32.mrf.mxu0  ;;  %v2129_v33 = vpop.f32.mrf.mxu1 }
 0x2d2   :  { %v2131_v34 = vpop.f32.mrf.mxu0  ;;  %v2133_v36 = vpop.f32.mrf.mxu1 }
 0x31b   :  { %v547_v6 = vpop.permute.xlu0 %546 }
 0x31c   :  { %v549_v5 = vsel %vm254_vm6, %v547_v6, %v2077_v1 }
 0x31d   :  { %v550_v11 = vpack.c.bf16 %v549_v5, %v549_v5 }
 0x31f   :  { %559 = vmatmul.bf16.vlgmr.msrb.gmra.mxu0 %v550_v11  ;;  %572 = vmatmul.bf16.vlgmr.msrb.gmra.mxu1 %v550_v11 }
 0x320   :  { %685 = vmatpush.bf16.msrb.mxu0 %v1913_v48  ;;  %698 = vmatpush.bf16.msrb.mxu1 %v1915_v53 }
 0x324   :  { %686 = vmatpush.bf16.msrb.mxu0 %v1918_v56  ;;  %699 = vmatpush.bf16.msrb.mxu1 %v1922_v57 }
 0x328   :  { %687 = vmatpush.bf16.msrb.mxu0 %v1926_v62  ;;  %700 = vmatpush.bf16.msrb.mxu1 %v1930_v63 }
 0x32c   :  { %688 = vmatpush.bf16.msrb.mxu0 %v1934_v7  ;;  %701 = vmatpush.bf16.msrb.mxu1 %v1943_v10 }
 0x330   :  { %689 = vmatpush.bf16.msrb.mxu0 %v1949_v21  ;;  %702 = vmatpush.bf16.msrb.mxu1 %v1953_v22 }
 0x334   :  { %690 = vmatpush.bf16.msrb.mxu0 %v1961_v39  ;;  %703 = vmatpush.bf16.msrb.mxu1 %v1965_v41 }
 0x338   :  { %v617_v13 = vpop.permute.xlu1 %616  ;;  %691 = vmatpush.bf16.msrb.mxu0 %v1969_v49  ;;  %704 = vmatpush.bf16.msrb.mxu1 %v1973_v50 }
 0x339   :  { %1581 = vmatmul.msk.bf16.vlgmr.msra.gmra.mxu0 %vm254_vm6, %v617_v13  ;;  %1582 = vmatmul.msk.bf16.vlgmr.msra.gmra.mxu1 %vm254_vm6, %v617_v13 }
 0x33c   :  { %692 = vmatpush.bf16.msrb.mxu0 %v1981_v58  ;;  %705 = vmatpush.bf16.msrb.mxu1 %v1983_v60 }
 0x340   :  { %893 = vmatpush.bf16.msra.mxu0 %v1871_v4  ;;  %906 = vmatpush.bf16.msra.mxu1 %v1879_v15 }
 0x344   :  { %894 = vmatpush.bf16.msra.mxu0 %v1877_v9  ;;  %907 = vmatpush.bf16.msra.mxu1 %v1886_v23 }
 0x348   :  { %895 = vmatpush.bf16.msra.mxu0 %v1890_v26  ;;  %908 = vmatpush.bf16.msra.mxu1 %v1894_v28 }
 0x34c   :  { %896 = vmatpush.bf16.msra.mxu0 %v1897_v29  ;;  %909 = vmatpush.bf16.msra.mxu1 %v1901_v32 }
 0x39c   :  { %v560_v37 = vpop.f32.mrf.mxu0  ;;  %v573_v38 = vpop.f32.mrf.mxu1 }
 0x39d   :  { %v598_v40 = vadd.f32 %v573_v38, %v2033_v12  ;;  %v577_v2 = vadd.f32 %v2048_v20, %v560_v37  ;;  %v177_v37 = vadd.f32 %v176_v17, %v1946_v18 }
 0x39f   :  { %600 = vrot.lane.b32.xlu2 %v598_v40, %s1801_s15  ;;  %v1580_v5 = vmul.f32 -1.442695, %v577_v2 }
 0x3a4   :  { %v562_v42 = vpop.f32.mrf.mxu0  ;;  %v575_v43 = vpop.f32.mrf.mxu1 }
 0x3b6   :  { %v630_v47 = vpop.f32.mrf.mxu0  ;;  %v643_v51 = vpop.f32.mrf.mxu1 }
 0x3b7   :  { %v647_v52 = vadd.f32 %v630_v47, %v148_v45  ;;  %v667_v47 = vadd.f32 %v1940_v8, %v643_v51 }
 0x3b9   :  { %v1583_v46 = vmul.f32 -1.442695, %v647_v52 }
 0x3bb   :  { %1663 = vpow2.f32 %v1583_v46 }
 0x3be   :  { %v632_v55 = vpop.f32.mrf.mxu0  ;;  %v645_v59 = vpop.f32.mrf.mxu1 }
 0x3c1   :  { %v1664_v61 = vpop.eup %1663 }
 0x3c2   :  { %v651_v0 = vadd.f32 1.0, %v1664_v61 }
 0x3c4   :  { %1665 = vrcp.f32 %v651_v0  ;;  %v663_v13 = vand.u32 2147483648, %v651_v0  ;;  %v661_v16 = vand.u32 2147483647, %v651_v0  ;;  %vm657_vm2 = vweird.f32 %v651_v0 }
 0x3c5   :  { %1667 = vpow2.f32 %v1580_v5 }
 0x3c6   :  { %v664_v43 = vor.u32 1.1754944e-38, %v663_v13  ;;  %vm662_vm4 = vcmp.eq.f32.partialorder %v661_v16, 8.507059e+37 }
 0x3ca   :  { %v1666_v3 = vpop.eup %1665 }
 0x3cb   :  { %v653_v6 = vmul.f32 %v1666_v3, %v651_v0  ;;  %vm658_vm1 = vweird.f32 %v1666_v3  ;;  %v1668_v55 = vpop.eup %1667 }
 0x3cc   :  { %vm659_vm3 = vmor %vm657_vm2, %vm658_vm1  ;;  %v581_v61 = vadd.f32 1.0, %v1668_v55 }
 0x3cd   :  { %v654_v11 = vsub.f32 1.0, %v653_v6 }
 0x3ce   :  { %v593_v13 = vand.u32 2147483648, %v581_v61  ;;  %vm587_vm7 = vweird.f32 %v581_v61  ;;  %v591_v51 = vand.u32 2147483647, %v581_v61 }
 0x3cf   :  { %v655_v40 = vmul.f32 %v1666_v3, %v654_v11 }
 0x3d0   :  { %vm592_vm9 = vcmp.eq.f32.partialorder %v591_v51, 8.507059e+37  ;;  %v150_v51 = vadd.f32 %v2115_v19, %v1908_v35 }
 0x3d1   :  { %v656_v42 = vadd.f32 %v1666_v3, %v655_v40  ;;  %v594_v40 = vor.u32 1.1754944e-38, %v593_v13 }
 0x3d3   :  { %v660_v45 = vsel %vm659_vm3, %v1666_v3, %v656_v42 }
 0x3d4   :  { %v665_v52 = vsel %vm662_vm4, %v664_v43, %v660_v45  ;;  %v597_v43 = vadd.f32 %v2055_v44, %v573_v38 }
 0x3d5   :  { %v668_v46 = vmul.f32 %v667_v47, %v665_v52 }
 0x3d7   :  { %v669_v59 = vadd.f32 %v668_v46, %v177_v37  ;;  %v671_v46 = vsub.f32 1.0, %v665_v52 }
 0x3d9   :  { %1669 = vtanh.f32 %v669_v59  ;;  %v677_v59 = vmul.f32 %v665_v52, %v2077_v1 }
 0x3da   :  { %1671 = vrcp.f32 %v581_v61 }
 0x3df   :  { %v1670_v2 = vpop.eup %1669 }
 0x3e0   :  { %673 = vrot.lane.b32.xlu1 %v1670_v2, %s1801_s15  ;;  %v1672_v6 = vpop.eup %1671 }
 0x3e1   :  { %v583_v0 = vmul.f32 %v1672_v6, %v581_v61  ;;  %vm588_vm5 = vweird.f32 %v1672_v6 }
 0x3e2   :  { %vm589_vm8 = vmor %vm587_vm7, %vm588_vm5 }
 0x3e3   :  { %v584_v5 = vsub.f32 1.0, %v583_v0 }
 0x3e5   :  { %v585_v11 = vmul.f32 %v1672_v6, %v584_v5 }
 0x3e7   :  { %v586_v3 = vadd.f32 %v1672_v6, %v585_v11 }
 0x3e9   :  { %v590_v17 = vsel %vm589_vm8, %v1672_v6, %v586_v3 }
 0x3ea   :  { %v595_v42 = vsel %vm592_vm9, %v594_v40, %v590_v17 }
 0x3eb   :  { %v606_v0 = vsub.f32 1.0, %v595_v42  ;;  %v612_v5 = vmul.f32 %v595_v42, %v2065_v54 }
 0x3f9   :  { %v601_v16 = vpop.permute.xlu2 %600 }
 0x3fa   :  { %v603_v45 = vmul.f32 %v601_v16, %v595_v42 }
 0x3fc   :  { %v604_v47 = vadd.f32 %v603_v45, %v597_v43 }
 0x3fe   :  { %1673 = vtanh.f32 %v604_v47 }
 0x404   :  { %v1674_v37 = vpop.eup %1673 }
 0x405   :  { %608 = vrot.lane.b32.xlu0 %v1674_v37, %s1801_s15 }
 0x452   :  { %v674_v55 = vpop.permute.xlu1 %673 }
 0x453   :  { %v676_v2 = vmul.f32 %v674_v55, %v671_v46 }
 0x455   :  { %v2145_v61 = vadd.f32 %v677_v59, %v676_v2 }
 0x457   :  { %v748_v6 = vpack.c.bf16 %v2145_v61, %v2145_v61 }
 0x459   :  { %750 = vrot.lane.b32.xlu0 %v748_v6, %s1801_s15 }
 0x477   :  { %v609_v38 = vpop.permute.xlu0 %608 }
 0x478   :  { %v611_v11 = vmul.f32 %v609_v38, %v606_v0 }
 0x47a   :  { %v2151_v3 = vadd.f32 %v612_v5, %v611_v11 }
 0x47c   :  { %680 = vrot.lane.b32.xlu2 %v2151_v3, %s1801_s15 }
 0x4cb   :  { %v751_v13 = vpop.permute.xlu0 %750 }
 0x4cc   :  { %1585 = vmatmul.msk.bf16.vlgmr.msrb.gmra.mxu2 %vm254_vm6, %v751_v13  ;;  %1586 = vmatmul.msk.bf16.vlgmr.msrb.gmra.mxu3 %vm254_vm6, %v751_v13 }
 0x4cd   :  { %1027 = vmatpush.bf16.msrb.mxu2 %v1871_v4  ;;  %1040 = vmatpush.bf16.msrb.mxu3 %v1879_v15 }
 0x4d1   :  { %1028 = vmatpush.bf16.msrb.mxu2 %v1877_v9  ;;  %1041 = vmatpush.bf16.msrb.mxu3 %v1886_v23 }
 0x4d5   :  { %1029 = vmatpush.bf16.msrb.mxu2 %v1890_v26  ;;  %1042 = vmatpush.bf16.msrb.mxu3 %v1894_v28 }
 0x4d6   :  { %v681_v54 = vpop.permute.xlu2 %680 }
 0x4d7   :  { %v683_v1 = vsel %vm254_vm6, %v681_v54, %v2145_v61 }
 0x4d8   :  { %v684_v52 = vpack.c.bf16 %v683_v1, %v683_v1 }
 0x4d9   :  { %1030 = vmatpush.bf16.msrb.mxu2 %v1897_v29  ;;  %1043 = vmatpush.bf16.msrb.mxu3 %v1901_v32 }
 0x4da   :  { %693 = vmatmul.bf16.vlgmr.msrb.gmra.mxu0 %v684_v52  ;;  %706 = vmatmul.bf16.vlgmr.msrb.gmra.mxu1 %v684_v52 }
 0x4db   :  { %953 = vmatpush.bf16.msrb.mxu0 %v1913_v48  ;;  %966 = vmatpush.bf16.msrb.mxu1 %v1915_v53 }
 0x4df   :  { %954 = vmatpush.bf16.msrb.mxu0 %v1918_v56  ;;  %967 = vmatpush.bf16.msrb.mxu1 %v1922_v57 }
 0x4e3   :  { %955 = vmatpush.bf16.msrb.mxu0 %v1926_v62  ;;  %968 = vmatpush.bf16.msrb.mxu1 %v1930_v63 }
 0x4e7   :  { %956 = vmatpush.bf16.msrb.mxu0 %v1934_v7  ;;  %969 = vmatpush.bf16.msrb.mxu1 %v1943_v10 }
 0x4eb   :  { %957 = vmatpush.bf16.msrb.mxu0 %v1949_v21  ;;  %970 = vmatpush.bf16.msrb.mxu1 %v1953_v22 }
 0x4ef   :  { %958 = vmatpush.bf16.msrb.mxu0 %v1961_v39  ;;  %971 = vmatpush.bf16.msrb.mxu1 %v1965_v41 }
 0x4f3   :  { %959 = vmatpush.bf16.msrb.mxu0 %v1969_v49  ;;  %972 = vmatpush.bf16.msrb.mxu1 %v1973_v50 }
 0x4f7   :  { %960 = vmatpush.bf16.msrb.mxu0 %v1981_v58  ;;  %973 = vmatpush.bf16.msrb.mxu1 %v1983_v60 }
 0x54f   :  { %v764_v17 = vpop.f32.mrf.mxu2  ;;  %v777_v40 = vpop.f32.mrf.mxu3 }
 0x550   :  { %v781_v16 = vadd.f32 %v764_v17, %v150_v51  ;;  %v801_v51 = vadd.f32 %v1940_v8, %v777_v40 }
 0x552   :  { %v1587_v42 = vmul.f32 -1.442695, %v781_v16  ;;  %v179_v16 = vadd.f32 %v2117_v24, %v1946_v18 }
 0x554   :  { %1675 = vpow2.f32 %v1587_v42 }
 0x557   :  { %v694_v43 = vpop.f32.mrf.mxu0  ;;  %v707_v45 = vpop.f32.mrf.mxu1 }
 0x558   :  { %v732_v47 = vadd.f32 %v707_v45, %v2033_v12  ;;  %v766_v37 = vpop.f32.mrf.mxu2  ;;  %v779_v46 = vpop.f32.mrf.mxu3 }
 0x559   :  { %v711_v46 = vadd.f32 %v2048_v20, %v694_v43 }
 0x55a   :  { %v1676_v55 = vpop.eup %1675  ;;  %734 = vrot.lane.b32.xlu1 %v732_v47, %s1801_s15 }
 0x55b   :  { %v785_v59 = vadd.f32 1.0, %v1676_v55  ;;  %v1584_v55 = vmul.f32 -1.442695, %v711_v46 }
 0x55d   :  { %1677 = vrcp.f32 %v785_v59  ;;  %v797_v5 = vand.u32 2147483648, %v785_v59  ;;  %v795_v13 = vand.u32 2147483647, %v785_v59  ;;  %vm791_vm11 = vweird.f32 %v785_v59 }
 0x55f   :  { %v696_v2 = vpop.f32.mrf.mxu0  ;;  %v709_v6 = vpop.f32.mrf.mxu1  ;;  %v798_v1 = vor.u32 1.1754944e-38, %v797_v5  ;;  %vm796_vm13 = vcmp.eq.f32.partialorder %v795_v13, 8.507059e+37 }
 0x563   :  { %v1678_v0 = vpop.eup %1677 }
 0x564   :  { %v787_v19 = vmul.f32 %v1678_v0, %v785_v59  ;;  %vm792_vm10 = vweird.f32 %v1678_v0 }
 0x565   :  { %vm793_vm12 = vmor %vm791_vm11, %vm792_vm10 }
 0x566   :  { %v788_v38 = vsub.f32 1.0, %v787_v19 }
 0x568   :  { %v789_v11 = vmul.f32 %v1678_v0, %v788_v38 }
 0x56a   :  { %v790_v54 = vadd.f32 %v1678_v0, %v789_v11 }
 0x56c   :  { %v794_v52 = vsel %vm793_vm12, %v1678_v0, %v790_v54 }
 0x56d   :  { %v799_v17 = vsel %vm796_vm13, %v798_v1, %v794_v52  ;;  %v731_v1 = vadd.f32 %v2055_v44, %v707_v45 }
 0x56e   :  { %v802_v42 = vmul.f32 %v801_v51, %v799_v17 }
 0x570   :  { %v803_v47 = vadd.f32 %v802_v42, %v179_v16  ;;  %v805_v42 = vsub.f32 1.0, %v799_v17 }
 0x572   :  { %1679 = vtanh.f32 %v803_v47 }
 0x573   :  { %1681 = vpow2.f32 %v1584_v55 }
 0x578   :  { %v1680_v37 = vpop.eup %1679 }
 0x579   :  { %807 = vrot.lane.b32.xlu0 %v1680_v37, %s1801_s15  ;;  %v1682_v59 = vpop.eup %1681  ;;  %v811_v37 = vmul.f32 %v799_v17, %v2145_v61 }
 0x57a   :  { %v715_v2 = vadd.f32 1.0, %v1682_v59 }
 0x57c   :  { %1683 = vrcp.f32 %v715_v2  ;;  %v727_v24 = vand.u32 2147483648, %v715_v2  ;;  %vm721_vm15 = vweird.f32 %v715_v2  ;;  %v725_v5 = vand.u32 2147483647, %v715_v2 }
 0x57e   :  { %v728_v13 = vor.u32 1.1754944e-38, %v727_v24  ;;  %vm726_vm1 = vcmp.eq.f32.partialorder %v725_v5, 8.507059e+37 }
 0x582   :  { %v1684_v6 = vpop.eup %1683 }
 0x583   :  { %v717_v0 = vmul.f32 %v1684_v6, %v715_v2  ;;  %vm722_vm14 = vweird.f32 %v1684_v6 }
 0x584   :  { %vm723_vm0 = vmor %vm721_vm15, %vm722_vm14 }
 0x585   :  { %v718_v40 = vsub.f32 1.0, %v717_v0 }
 0x587   :  { %v719_v19 = vmul.f32 %v1684_v6, %v718_v40 }
 0x589   :  { %v720_v38 = vadd.f32 %v1684_v6, %v719_v19 }
 0x58b   :  { %v724_v11 = vsel %vm723_vm0, %v1684_v6, %v720_v38  ;;  %v153_v38 = vadd.f32 %v2119_v25, %v1908_v35 }
 0x58c   :  { %v729_v43 = vsel %vm726_vm1, %v728_v13, %v724_v11 }
 0x58d   :  { %v740_v2 = vsub.f32 1.0, %v729_v43  ;;  %v746_v6 = vmul.f32 %v729_v43, %v2151_v3 }
 0x5cc   :  { %v735_v54 = vpop.permute.xlu1 %734 }
 0x5cd   :  { %v737_v52 = vmul.f32 %v735_v54, %v729_v43 }
 0x5cf   :  { %v738_v51 = vadd.f32 %v737_v52, %v731_v1 }
 0x5d1   :  { %1685 = vtanh.f32 %v738_v51 }
 0x5d7   :  { %v1686_v16 = vpop.eup %1685 }
 0x5d8   :  { %742 = vrot.lane.b32.xlu2 %v1686_v16, %s1801_s15 }
 0x5eb   :  { %v808_v47 = vpop.permute.xlu0 %807 }
 0x5ec   :  { %v810_v46 = vmul.f32 %v808_v47, %v805_v42 }
 0x5ee   :  { %v2195_v55 = vadd.f32 %v811_v37, %v810_v46 }
 0x5f0   :  { %v882_v59 = vpack.c.bf16 %v2195_v55, %v2195_v55 }
 0x5f2   :  { %884 = vrot.lane.b32.xlu2 %v882_v59, %s1801_s15 }
 0x632   :  { %v743_v45 = vpop.permute.xlu2 %742 }
 0x633   :  { %v745_v0 = vmul.f32 %v743_v45, %v740_v2 }
 0x635   :  { %v2201_v40 = vadd.f32 %v746_v6, %v745_v0  ;;  %v182_v0 = vadd.f32 %v2121_v27, %v1946_v18 }
 0x637   :  { %814 = vrot.lane.b32.xlu1 %v2201_v40, %s1801_s15 }
 0x64c   :  { %v885_v19 = vpop.permute.xlu2 %884 }
 0x64d   :  { %1589 = vmatmul.msk.bf16.vlgmr.msra.gmra.mxu0 %vm254_vm6, %v885_v19  ;;  %1590 = vmatmul.msk.bf16.vlgmr.msra.gmra.mxu1 %vm254_vm6, %v885_v19 }
 0x64e   :  { %1161 = vmatpush.bf16.msra.mxu0 %v1871_v4  ;;  %1174 = vmatpush.bf16.msra.mxu1 %v1879_v15 }
 0x652   :  { %1162 = vmatpush.bf16.msra.mxu0 %v1877_v9  ;;  %1175 = vmatpush.bf16.msra.mxu1 %v1886_v23 }
 0x656   :  { %1163 = vmatpush.bf16.msra.mxu0 %v1890_v26  ;;  %1176 = vmatpush.bf16.msra.mxu1 %v1894_v28 }
 0x65a   :  { %1164 = vmatpush.bf16.msra.mxu0 %v1897_v29  ;;  %1177 = vmatpush.bf16.msra.mxu1 %v1901_v32 }
 0x6a9   :  { %v815_v61 = vpop.permute.xlu1 %814 }
 0x6aa   :  { %v817_v3 = vsel %vm254_vm6, %v815_v61, %v2195_v55 }
 0x6ab   :  { %v818_v17 = vpack.c.bf16 %v817_v3, %v817_v3 }
 0x6ad   :  { %827 = vmatmul.bf16.vlgmr.msra.gmra.mxu2 %v818_v17  ;;  %840 = vmatmul.bf16.vlgmr.msra.gmra.mxu3 %v818_v17 }
 0x6ae   :  { %1087 = vmatpush.bf16.msra.mxu2 %v1913_v48  ;;  %1100 = vmatpush.bf16.msra.mxu3 %v1915_v53 }
 0x6b2   :  { %1088 = vmatpush.bf16.msra.mxu2 %v1918_v56  ;;  %1101 = vmatpush.bf16.msra.mxu3 %v1922_v57 }
 0x6b6   :  { %1089 = vmatpush.bf16.msra.mxu2 %v1926_v62  ;;  %1102 = vmatpush.bf16.msra.mxu3 %v1930_v63 }
 0x6ba   :  { %1090 = vmatpush.bf16.msra.mxu2 %v1934_v7  ;;  %1103 = vmatpush.bf16.msra.mxu3 %v1943_v10 }
 0x6be   :  { %1091 = vmatpush.bf16.msra.mxu2 %v1949_v21  ;;  %1104 = vmatpush.bf16.msra.mxu3 %v1953_v22 }
 0x6c2   :  { %1092 = vmatpush.bf16.msra.mxu2 %v1961_v39  ;;  %1105 = vmatpush.bf16.msra.mxu3 %v1965_v41 }
 0x6c6   :  { %1093 = vmatpush.bf16.msra.mxu2 %v1969_v49  ;;  %1106 = vmatpush.bf16.msra.mxu3 %v1973_v50 }
 0x6ca   :  { %v898_v24 = vpop.f32.mrf.mxu0  ;;  %v911_v5 = vpop.f32.mrf.mxu1  ;;  %1094 = vmatpush.bf16.msra.mxu2 %v1981_v58  ;;  %1107 = vmatpush.bf16.msra.mxu3 %v1983_v60 }
 0x6cb   :  { %v915_v11 = vadd.f32 %v898_v24, %v153_v38  ;;  %v935_v45 = vadd.f32 %v1940_v8, %v911_v5 }
 0x6cd   :  { %v1591_v13 = vmul.f32 -1.442695, %v915_v11 }
 0x6cf   :  { %1687 = vpow2.f32 %v1591_v13 }
 0x6d2   :  { %v900_v54 = vpop.f32.mrf.mxu0  ;;  %v913_v43 = vpop.f32.mrf.mxu1 }
 0x6d5   :  { %v1688_v1 = vpop.eup %1687 }
 0x6d6   :  { %v919_v52 = vadd.f32 1.0, %v1688_v1 }
 0x6d8   :  { %1689 = vrcp.f32 %v919_v52  ;;  %v931_v47 = vand.u32 2147483648, %v919_v52  ;;  %v929_v25 = vand.u32 2147483647, %v919_v52  ;;  %vm925_vm3 = vweird.f32 %v919_v52 }
 0x6da   :  { %v932_v59 = vor.u32 1.1754944e-38, %v931_v47  ;;  %vm930_vm5 = vcmp.eq.f32.partialorder %v929_v25, 8.507059e+37 }
 0x6de   :  { %v1690_v51 = vpop.eup %1689 }
 0x6df   :  { %v921_v16 = vmul.f32 %v1690_v51, %v919_v52  ;;  %vm926_vm2 = vweird.f32 %v1690_v51 }
 0x6e0   :  { %vm927_vm4 = vmor %vm925_vm3, %vm926_vm2 }
 0x6e1   :  { %v922_v42 = vsub.f32 1.0, %v921_v16 }
 0x6e3   :  { %v923_v37 = vmul.f32 %v1690_v51, %v922_v42 }
 0x6e5   :  { %v924_v46 = vadd.f32 %v1690_v51, %v923_v37 }
 0x6e7   :  { %v928_v2 = vsel %vm927_vm4, %v1690_v51, %v924_v46 }
 0x6e8   :  { %v933_v6 = vsel %vm930_vm5, %v932_v59, %v928_v2 }
 0x6e9   :  { %v936_v19 = vmul.f32 %v935_v45, %v933_v6 }
 0x6eb   :  { %v937_v61 = vadd.f32 %v936_v19, %v182_v0 }
 0x6ed   :  { %1691 = vtanh.f32 %v937_v61  ;;  %v939_v61 = vsub.f32 1.0, %v933_v6 }
 0x6f3   :  { %v1692_v3 = vpop.eup %1691 }
 0x6f4   :  { %941 = vrot.lane.b32.xlu2 %v1692_v3, %s1801_s15 }
 0x730   :  { %v828_v17 = vpop.f32.mrf.mxu2  ;;  %v841_v38 = vpop.f32.mrf.mxu3 }
 0x731   :  { %v866_v24 = vadd.f32 %v841_v38, %v2033_v12  ;;  %v845_v8 = vadd.f32 %v2048_v20, %v828_v17  ;;  %v865_v2 = vadd.f32 %v2055_v44, %v841_v38 }
 0x733   :  { %868 = vrot.lane.b32.xlu0 %v866_v24, %s1801_s15  ;;  %v1588_v5 = vmul.f32 -1.442695, %v845_v8  ;;  %v945_v24 = vmul.f32 %v933_v6, %v2195_v55 }
 0x735   :  { %1693 = vpow2.f32 %v1588_v5 }
 0x738   :  { %v830_v11 = vpop.f32.mrf.mxu2  ;;  %v843_v13 = vpop.f32.mrf.mxu3 }
 0x73b   :  { %v1694_v54 = vpop.eup %1693 }
 0x73c   :  { %v849_v27 = vadd.f32 1.0, %v1694_v54 }
 0x73e   :  { %1695 = vrcp.f32 %v849_v27  ;;  %v861_v42 = vand.u32 2147483648, %v849_v27  ;;  %vm855_vm8 = vweird.f32 %v849_v27  ;;  %v859_v47 = vand.u32 2147483647, %v849_v27 }
 0x740   :  { %v862_v25 = vor.u32 1.1754944e-38, %v861_v42  ;;  %vm860_vm10 = vcmp.eq.f32.partialorder %v859_v47, 8.507059e+37 }
 0x744   :  { %v1696_v43 = vpop.eup %1695 }
 0x745   :  { %v851_v1 = vmul.f32 %v1696_v43, %v849_v27  ;;  %vm856_vm7 = vweird.f32 %v1696_v43 }
 0x746   :  { %vm857_vm9 = vmor %vm855_vm8, %vm856_vm7 }
 0x747   :  { %v852_v52 = vsub.f32 1.0, %v851_v1 }
 0x749   :  { %v853_v51 = vmul.f32 %v1696_v43, %v852_v52 }
 0x74b   :  { %v854_v16 = vadd.f32 %v1696_v43, %v853_v51 }
 0x74d   :  { %v858_v37 = vsel %vm857_vm9, %v1696_v43, %v854_v16 }
 0x74e   :  { %v863_v59 = vsel %vm860_vm10, %v862_v25, %v858_v37  ;;  %v942_v19 = vpop.permute.xlu2 %941 }
 0x74f   :  { %v944_v3 = vmul.f32 %v942_v19, %v939_v61  ;;  %v874_v8 = vsub.f32 1.0, %v863_v59  ;;  %v880_v5 = vmul.f32 %v863_v59, %v2201_v40 }
 0x751   :  { %v2245_v11 = vadd.f32 %v945_v24, %v944_v3 }
 0x753   :  { %v1016_v13 = vpack.c.bf16 %v2245_v11, %v2245_v11 }
 0x7a5   :  { %v869_v46 = vpop.permute.xlu0 %868 }
 0x7a6   :  { %v871_v45 = vmul.f32 %v869_v46, %v863_v59  ;;  %v2288_v59 = vld [vmem:[%s2399_s4] ss:$0 sm:$0xff] }
 0x7a8   :  { %v872_v0 = vadd.f32 %v871_v45, %v865_v2 }
 0x7aa   :  { %1697 = vtanh.f32 %v872_v0  ;;  %v184_v0 = vadd.f32 %v2125_v30, %v1946_v18 }
 0x7b0   :  { %v1698_v17 = vpop.eup %1697 }
 0x7b1   :  { %876 = vrot.lane.b32.xlu1 %v1698_v17, %s1801_s15 }
 0x7b9   :  { %1018 = vrot.lane.b32.xlu1 %v1016_v13, %s1801_s15 }
 0x823   :  { %v877_v38 = vpop.permute.xlu1 %876 }
 0x824   :  { %v879_v54 = vmul.f32 %v877_v38, %v874_v8 }
 0x826   :  { %v2251_v27 = vadd.f32 %v880_v5, %v879_v54 }
 0x828   :  { %948 = vrot.lane.b32.xlu0 %v2251_v27, %s1801_s15 }
 0x82b   :  { %v1019_v55 = vpop.permute.xlu1 %1018 }
 0x82c   :  { %1593 = vmatmul.msk.bf16.vlgmr.msrb.gmra.mxu2 %vm254_vm6, %v1019_v55  ;;  %1594 = vmatmul.msk.bf16.vlgmr.msrb.gmra.mxu3 %vm254_vm6, %v1019_v55 }
 0x82d   :  { %1295 = vmatpush.bf16.msrb.mxu2 %v1871_v4  ;;  %1308 = vmatpush.bf16.msrb.mxu3 %v1879_v15  ;;  %v155_v4 = vadd.f32 %v2123_v14, %v1908_v35 }
 0x831   :  { %1296 = vmatpush.bf16.msrb.mxu2 %v1877_v9  ;;  %1309 = vmatpush.bf16.msrb.mxu3 %v1886_v23 }
 0x835   :  { %1297 = vmatpush.bf16.msrb.mxu2 %v1890_v26  ;;  %1310 = vmatpush.bf16.msrb.mxu3 %v1894_v28 }
 0x839   :  { %1298 = vmatpush.bf16.msrb.mxu2 %v1897_v29  ;;  %1311 = vmatpush.bf16.msrb.mxu3 %v1901_v32 }
 0x89a   :  { %v949_v40 = vpop.permute.xlu0 %948 }
 0x89b   :  { %v951_v6 = vsel %vm254_vm6, %v949_v40, %v2245_v11 }
 0x89c   :  { %v952_v43 = vpack.c.bf16 %v951_v6, %v951_v6 }
 0x89e   :  { %961 = vmatmul.bf16.vlgmr.msrb.gmra.mxu0 %v952_v43  ;;  %974 = vmatmul.bf16.vlgmr.msrb.gmra.mxu1 %v952_v43 }
 0x89f   :  { %1221 = vmatpush.bf16.msrb.mxu0 %v1913_v48  ;;  %1234 = vmatpush.bf16.msrb.mxu1 %v1915_v53 }
 0x8a3   :  { %1222 = vmatpush.bf16.msrb.mxu0 %v1918_v56  ;;  %1235 = vmatpush.bf16.msrb.mxu1 %v1922_v57 }
 0x8a7   :  { %1223 = vmatpush.bf16.msrb.mxu0 %v1926_v62  ;;  %1236 = vmatpush.bf16.msrb.mxu1 %v1930_v63 }
 0x8ab   :  { %1224 = vmatpush.bf16.msrb.mxu0 %v1934_v7  ;;  %1237 = vmatpush.bf16.msrb.mxu1 %v1943_v10 }
 0x8af   :  { %v1032_v9 = vpop.f32.mrf.mxu2  ;;  %v1045_v15 = vpop.f32.mrf.mxu3  ;;  %1225 = vmatpush.bf16.msrb.mxu0 %v1949_v21  ;;  %1238 = vmatpush.bf16.msrb.mxu1 %v1953_v22 }
 0x8b0   :  { %v1049_v23 = vadd.f32 %v1032_v9, %v155_v4  ;;  %v1069_v2 = vadd.f32 %v2288_v59, %v1045_v15 }
 0x8b2   :  { %v1595_v26 = vmul.f32 -1.442695, %v1049_v23 }
 0x8b3   :  { %1226 = vmatpush.bf16.msrb.mxu0 %v1961_v39  ;;  %1239 = vmatpush.bf16.msrb.mxu1 %v1965_v41 }
 0x8b4   :  { %1699 = vpow2.f32 %v1595_v26 }
 0x8b7   :  { %v1034_v28 = vpop.f32.mrf.mxu2  ;;  %v1047_v29 = vpop.f32.mrf.mxu3  ;;  %1227 = vmatpush.bf16.msrb.mxu0 %v1969_v49  ;;  %1240 = vmatpush.bf16.msrb.mxu1 %v1973_v50 }
 0x8ba   :  { %v1700_v32 = vpop.eup %1699 }
 0x8bb   :  { %v1053_v14 = vadd.f32 1.0, %v1700_v32  ;;  %1228 = vmatpush.bf16.msrb.mxu0 %v1981_v58  ;;  %1241 = vmatpush.bf16.msrb.mxu1 %v1983_v60 }
 0x8bd   :  { %1701 = vrcp.f32 %v1053_v14  ;;  %v1065_v16 = vand.u32 2147483648, %v1053_v14  ;;  %v1063_v47 = vand.u32 2147483647, %v1053_v14  ;;  %vm1059_vm12 = vweird.f32 %v1053_v14 }
 0x8bf   :  { %v1066_v25 = vor.u32 1.1754944e-38, %v1065_v16  ;;  %vm1064_vm14 = vcmp.eq.f32.partialorder %v1063_v47, 8.507059e+37 }
 0x8c3   :  { %v1702_v1 = vpop.eup %1701 }
 0x8c4   :  { %v1055_v52 = vmul.f32 %v1702_v1, %v1053_v14  ;;  %vm1060_vm11 = vweird.f32 %v1702_v1 }
 0x8c5   :  { %vm1061_vm13 = vmor %vm1059_vm12, %vm1060_vm11 }
 0x8c6   :  { %v1056_v51 = vsub.f32 1.0, %v1055_v52 }
 0x8c8   :  { %v1057_v42 = vmul.f32 %v1702_v1, %v1056_v51 }
 0x8ca   :  { %v1058_v37 = vadd.f32 %v1702_v1, %v1057_v42 }
 0x8cc   :  { %v1062_v46 = vsel %vm1061_vm13, %v1702_v1, %v1058_v37 }
 0x8cd   :  { %v1067_v45 = vsel %vm1064_vm14, %v1066_v25, %v1062_v46 }
 0x8ce   :  { %v1070_v19 = vmul.f32 %v1069_v2, %v1067_v45  ;;  %v1073_v51 = vsub.f32 1.0, %v1067_v45  ;;  %v1079_v47 = vmul.f32 %v1067_v45, %v2245_v11 }
 0x8d0   :  { %v1071_v61 = vadd.f32 %v1070_v19, %v184_v0 }
 0x8d2   :  { %1703 = vtanh.f32 %v1071_v61 }
 0x8d8   :  { %v1704_v3 = vpop.eup %1703 }
 0x8d9   :  { %1075 = vrot.lane.b32.xlu1 %v1704_v3, %s1801_s15 }
 0x91b   :  { %v962_v17 = vpop.f32.mrf.mxu0  ;;  %v975_v24 = vpop.f32.mrf.mxu1 }
 0x91c   :  { %v1000_v13 = vadd.f32 %v975_v24, %v2033_v12  ;;  %v979_v5 = vadd.f32 %v2048_v20, %v962_v17  ;;  %v999_v32 = vadd.f32 %v2055_v44, %v975_v24 }
 0x91e   :  { %1002 = vrot.lane.b32.xlu2 %v1000_v13, %s1801_s15  ;;  %v1592_v54 = vmul.f32 -1.442695, %v979_v5  ;;  %v187_v13 = vadd.f32 %v2129_v33, %v1946_v18 }
 0x920   :  { %1705 = vpow2.f32 %v1592_v54 }
 0x923   :  { %v964_v8 = vpop.f32.mrf.mxu0  ;;  %v977_v38 = vpop.f32.mrf.mxu1 }
 0x926   :  { %v1706_v55 = vpop.eup %1705 }
 0x927   :  { %v983_v30 = vadd.f32 1.0, %v1706_v55 }
 0x929   :  { %1707 = vrcp.f32 %v983_v30  ;;  %v995_v15 = vand.u32 2147483648, %v983_v30  ;;  %vm989_vm0 = vweird.f32 %v983_v30  ;;  %v993_v23 = vand.u32 2147483647, %v983_v30 }
 0x92b   :  { %v996_v28 = vor.u32 1.1754944e-38, %v995_v15  ;;  %vm994_vm2 = vcmp.eq.f32.partialorder %v993_v23, 8.507059e+37 }
 0x92f   :  { %v1708_v40 = vpop.eup %1707 }
 0x930   :  { %v985_v6 = vmul.f32 %v1708_v40, %v983_v30  ;;  %vm990_vm15 = vweird.f32 %v1708_v40 }
 0x931   :  { %vm991_vm1 = vmor %vm989_vm0, %vm990_vm15 }
 0x932   :  { %v986_v43 = vsub.f32 1.0, %v985_v6 }
 0x934   :  { %v987_v4 = vmul.f32 %v1708_v40, %v986_v43  ;;  %v2341_v43 = vld [vmem:[%s2401_s6] ss:$0 sm:$0xff] }
 0x936   :  { %v988_v9 = vadd.f32 %v1708_v40, %v987_v4 }
 0x938   :  { %v992_v26 = vsel %vm991_vm1, %v1708_v40, %v988_v9 }
 0x939   :  { %v997_v20 = vsel %vm994_vm2, %v996_v28, %v992_v26 }
 0x93a   :  { %v1008_v46 = vsub.f32 1.0, %v997_v20  ;;  %v1014_v2 = vmul.f32 %v997_v20, %v2251_v27 }
 0x94b   :  { %v1076_v52 = vpop.permute.xlu1 %1075 }
 0x94c   :  { %v1078_v16 = vmul.f32 %v1076_v52, %v1073_v51 }
 0x94e   :  { %v2300_v37 = vadd.f32 %v1079_v47, %v1078_v16 }
 0x950   :  { %v1150_v25 = vpack.c.bf16 %v2300_v37, %v2300_v37 }
 0x978   :  { %v1003_v29 = vpop.permute.xlu2 %1002 }
 0x979   :  { %v1005_v14 = vmul.f32 %v1003_v29, %v997_v20 }
 0x97b   :  { %v1006_v1 = vadd.f32 %v1005_v14, %v999_v32 }
 0x97d   :  { %1709 = vtanh.f32 %v1006_v1 }
 0x983   :  { %v1710_v42 = vpop.eup %1709 }
 0x984   :  { %1010 = vrot.lane.b32.xlu0 %v1710_v42, %s1801_s15  ;;  %v2347_v42 = vld [vmem:[%s2402_s7] ss:$0 sm:$0xff] }
 0x98c   :  { %1152 = vrot.lane.b32.xlu0 %v1150_v25, %s1801_s15 }
 0x9f6   :  { %v1011_v44 = vpop.permute.xlu0 %1010 }
 0x9f7   :  { %v1013_v0 = vmul.f32 %v1011_v44, %v1008_v46 }
 0x9f9   :  { %v2306_v19 = vadd.f32 %v1014_v2, %v1013_v0 }
 0x9fb   :  { %1082 = vrot.lane.b32.xlu2 %v2306_v19, %s1801_s15 }
 0x9fe   :  { %v1153_v11 = vpop.permute.xlu0 %1152 }
 0x9ff   :  { %1597 = vmatmul.msk.bf16.vlgmr.msra.gmra.mxu0 %vm254_vm6, %v1153_v11  ;;  %1598 = vmatmul.msk.bf16.vlgmr.msra.gmra.mxu1 %vm254_vm6, %v1153_v11 }
 0xa55   :  { %v1083_v45 = vpop.permute.xlu2 %1082 }
 0xa56   :  { %v1085_v61 = vsel %vm254_vm6, %v1083_v45, %v2300_v37 }
 0xa57   :  { %v1086_v3 = vpack.c.bf16 %v1085_v61, %v1085_v61 }
 0xa59   :  { %1095 = vmatmul.bf16.vlgmr.msra.gmra.mxu2 %v1086_v3  ;;  %1108 = vmatmul.bf16.vlgmr.msra.gmra.mxu3 %v1086_v3 }
 0xa5a   :  { %1355 = vmatpush.bf16.msra.mxu2 %v1913_v48  ;;  %1368 = vmatpush.bf16.msra.mxu3 %v1915_v53  ;;  %v158_v48 = vadd.f32 %v2127_v31, %v1908_v35 }
 0xa5e   :  { %1356 = vmatpush.bf16.msra.mxu2 %v1918_v56  ;;  %1369 = vmatpush.bf16.msra.mxu3 %v1922_v57 }
 0xa62   :  { %1357 = vmatpush.bf16.msra.mxu2 %v1926_v62  ;;  %1370 = vmatpush.bf16.msra.mxu3 %v1930_v63 }
 0xa66   :  { %1358 = vmatpush.bf16.msra.mxu2 %v1934_v7  ;;  %1371 = vmatpush.bf16.msra.mxu3 %v1943_v10 }
 0xa6a   :  { %1359 = vmatpush.bf16.msra.mxu2 %v1949_v21  ;;  %1372 = vmatpush.bf16.msra.mxu3 %v1953_v22 }
 0xa6e   :  { %1360 = vmatpush.bf16.msra.mxu2 %v1961_v39  ;;  %1373 = vmatpush.bf16.msra.mxu3 %v1965_v41 }
 0xa72   :  { %1361 = vmatpush.bf16.msra.mxu2 %v1969_v49  ;;  %1374 = vmatpush.bf16.msra.mxu3 %v1973_v50 }
 0xa76   :  { %1362 = vmatpush.bf16.msra.mxu2 %v1981_v58  ;;  %1375 = vmatpush.bf16.msra.mxu3 %v1983_v60 }
 0xa7c   :  { %v1166_v53 = vpop.f32.mrf.mxu0  ;;  %v1179_v56 = vpop.f32.mrf.mxu1 }
 0xa7d   :  { %v1183_v57 = vadd.f32 %v1166_v53, %v158_v48  ;;  %v1203_v17 = vadd.f32 %v2288_v59, %v1179_v56 }
 0xa7f   :  { %v1599_v62 = vmul.f32 -1.442695, %v1183_v57 }
 0xa81   :  { %1711 = vpow2.f32 %v1599_v62 }
 0xa84   :  { %v1168_v63 = vpop.f32.mrf.mxu0  ;;  %v1181_v7 = vpop.f32.mrf.mxu1 }
 0xa87   :  { %v1712_v10 = vpop.eup %1711 }
 0xa88   :  { %v1187_v21 = vadd.f32 1.0, %v1712_v10 }
 0xa8a   :  { %1713 = vrcp.f32 %v1187_v21  ;;  %v1199_v49 = vand.u32 2147483648, %v1187_v21  ;;  %v1197_v58 = vand.u32 2147483647, %v1187_v21  ;;  %vm1193_vm4 = vweird.f32 %v1187_v21 }
 0xa8c   :  { %v1200_v31 = vor.u32 1.1754944e-38, %v1199_v49  ;;  %vm1198_vm7 = vcmp.eq.f32.partialorder %v1197_v58, 8.507059e+37 }
 0xa90   :  { %v1714_v22 = vpop.eup %1713 }
 0xa91   :  { %v1189_v39 = vmul.f32 %v1714_v22, %v1187_v21  ;;  %vm1194_vm3 = vweird.f32 %v1714_v22 }
 0xa92   :  { %vm1195_vm5 = vmor %vm1193_vm4, %vm1194_vm3 }
 0xa93   :  { %v1190_v41 = vsub.f32 1.0, %v1189_v39 }
 0xa95   :  { %v1191_v50 = vmul.f32 %v1714_v22, %v1190_v41 }
 0xa97   :  { %v1192_v60 = vadd.f32 %v1714_v22, %v1191_v50 }
 0xa99   :  { %v1196_v27 = vsel %vm1195_vm5, %v1714_v22, %v1192_v60 }
 0xa9a   :  { %v1201_v24 = vsel %vm1198_vm7, %v1200_v31, %v1196_v27 }
 0xa9b   :  { %v1204_v8 = vmul.f32 %v1203_v17, %v1201_v24  ;;  %v1207_v2 = vsub.f32 1.0, %v1201_v24  ;;  %v1213_v45 = vmul.f32 %v1201_v24, %v2300_v37 }
 0xa9d   :  { %v1205_v38 = vadd.f32 %v1204_v8, %v187_v13 }
 0xa9f   :  { %1715 = vtanh.f32 %v1205_v38 }
 0xaa5   :  { %v1716_v5 = vpop.eup %1715 }
 0xaa6   :  { %1209 = vrot.lane.b32.xlu0 %v1716_v5, %s1801_s15 }
 0xadc   :  { %v1096_v54 = vpop.f32.mrf.mxu2  ;;  %v1109_v55 = vpop.f32.mrf.mxu3 }
 0xadd   :  { %v1134_v30 = vadd.f32 %v1109_v55, %v2033_v12  ;;  %v1113_v33 = vadd.f32 %v2341_v43, %v1096_v54  ;;  %v1133_v47 = vadd.f32 %v2347_v42, %v1109_v55  ;;  %v189_v55 = vadd.f32 %v2133_v36, %v1946_v18 }
 0xadf   :  { %1136 = vrot.lane.b32.xlu1 %v1134_v30, %s1801_s15  ;;  %v1596_v4 = vmul.f32 -1.442695, %v1113_v33 }
 0xae1   :  { %1717 = vpow2.f32 %v1596_v4 }
 0xae4   :  { %v1098_v40 = vpop.f32.mrf.mxu2  ;;  %v1111_v6 = vpop.f32.mrf.mxu3 }
 0xae7   :  { %v1718_v9 = vpop.eup %1717 }
 0xae8   :  { %v1117_v15 = vadd.f32 1.0, %v1718_v9 }
 0xaea   :  { %1719 = vrcp.f32 %v1117_v15  ;;  %v1129_v32 = vand.u32 2147483648, %v1117_v15  ;;  %vm1123_vm9 = vweird.f32 %v1117_v15  ;;  %v1127_v14 = vand.u32 2147483647, %v1117_v15 }
 0xaec   :  { %v1130_v52 = vor.u32 1.1754944e-38, %v1129_v32  ;;  %vm1128_vm11 = vcmp.eq.f32.partialorder %v1127_v14, 8.507059e+37 }
 0xaf0   :  { %v1720_v23 = vpop.eup %1719 }
 0xaf1   :  { %v1119_v26 = vmul.f32 %v1720_v23, %v1117_v15  ;;  %vm1124_vm8 = vweird.f32 %v1720_v23 }
 0xaf2   :  { %vm1125_vm10 = vmor %vm1123_vm9, %vm1124_vm8  ;;  %vm1437_vm9 = vcmask 7168  }
 0xaf3   :  { %v1120_v28 = vsub.f32 1.0, %v1119_v26 }
 0xaf5   :  { %v1121_v29 = vmul.f32 %v1720_v23, %v1120_v28 }
 0xaf7   :  { %v1122_v20 = vadd.f32 %v1720_v23, %v1121_v29 }
 0xaf9   :  { %v1126_v1 = vsel %vm1125_vm10, %v1720_v23, %v1122_v20 }
 0xafa   :  { %v1131_v16 = vsel %vm1128_vm11, %v1130_v52, %v1126_v1 }
 0xafb   :  { %v1142_v48 = vsub.f32 1.0, %v1131_v16  ;;  %v1148_v56 = vmul.f32 %v1131_v16, %v2306_v19  ;;  %v160_v19 = vadd.f32 %v2131_v34, %v1908_v35 }
 0xb18   :  { %v1210_v44 = vpop.permute.xlu0 %1209 }
 0xb19   :  { %v1212_v0 = vmul.f32 %v1210_v44, %v1207_v2 }
 0xb1b   :  { %v2352_v61 = vadd.f32 %v1213_v45, %v1212_v0 }
 0xb1d   :  { %v1284_v3 = vpack.c.bf16 %v2352_v61, %v2352_v61 }
 0xb51   :  { %v1137_v51 = vpop.permute.xlu1 %1136 }
 0xb52   :  { %v1139_v25 = vmul.f32 %v1137_v51, %v1131_v16 }
 0xb54   :  { %v1140_v46 = vadd.f32 %v1139_v25, %v1133_v47 }
 0xb56   :  { %1721 = vtanh.f32 %v1140_v46 }
 0xb5c   :  { %v1722_v11 = vpop.eup %1721 }
 0xb5d   :  { %1144 = vrot.lane.b32.xlu2 %v1722_v11, %s1801_s15 }
 0xb65   :  { %1286 = vrot.lane.b32.xlu2 %v1284_v3, %s1801_s15 }
 0xbb7   :  { %v1145_v53 = vpop.permute.xlu2 %1144 }
 0xbb8   :  { %v1147_v57 = vmul.f32 %v1145_v53, %v1142_v48 }
 0xbba   :  { %v2358_v62 = vadd.f32 %v1148_v56, %v1147_v57 }
 0xbbc   :  { %1216 = vrot.lane.b32.xlu1 %v2358_v62, %s1801_s15 }
 0xbbf   :  { %v1287_v37 = vpop.permute.xlu2 %1286 }
 0xbc0   :  { %1601 = vmatmul.msk.bf16.vlgmr.msrb.gmra.mxu2 %vm254_vm6, %v1287_v37  ;;  %1602 = vmatmul.msk.bf16.vlgmr.msrb.gmra.mxu3 %vm254_vm6, %v1287_v37 }
 0xc2e   :  { %v1217_v63 = vpop.permute.xlu1 %1216 }
 0xc2f   :  { %v1219_v7 = vsel %vm254_vm6, %v1217_v63, %v2352_v61 }
 0xc30   :  { %v1220_v10 = vpack.c.bf16 %v1219_v7, %v1219_v7 }
 0xc32   :  { %1229 = vmatmul.bf16.vlgmr.msrb.gmra.mxu0 %v1220_v10  ;;  %1242 = vmatmul.bf16.vlgmr.msrb.gmra.mxu1 %v1220_v10 }
 0xc43   :  { %v1300_v21 = vpop.f32.mrf.mxu2  ;;  %v1313_v22 = vpop.f32.mrf.mxu3 }
 0xc44   :  { %v1317_v39 = vadd.f32 %v1300_v21, %v160_v19  ;;  %v1337_v5 = vadd.f32 %v2288_v59, %v1313_v22 }
 0xc46   :  { %v1603_v41 = vmul.f32 -1.442695, %v1317_v39 }
 0xc48   :  { %1723 = vpow2.f32 %v1603_v41 }
 0xc4b   :  { %v1302_v49 = vpop.f32.mrf.mxu2  ;;  %v1315_v50 = vpop.f32.mrf.mxu3 }
 0xc4e   :  { %v1724_v58 = vpop.eup %1723 }
 0xc4f   :  { %v1321_v60 = vadd.f32 1.0, %v1724_v58 }
 0xc51   :  { %1725 = vrcp.f32 %v1321_v60  ;;  %v1333_v24 = vand.u32 2147483648, %v1321_v60  ;;  %v1331_v8 = vand.u32 2147483647, %v1321_v60  ;;  %vm1327_vm13 = vweird.f32 %v1321_v60 }
 0xc53   :  { %v1334_v35 = vor.u32 1.1754944e-38, %v1333_v24  ;;  %vm1332_vm15 = vcmp.eq.f32.partialorder %v1331_v8, 8.507059e+37 }
 0xc57   :  { %v1726_v31 = vpop.eup %1725 }
 0xc58   :  { %v1323_v27 = vmul.f32 %v1726_v31, %v1321_v60  ;;  %vm1328_vm12 = vweird.f32 %v1726_v31 }
 0xc59   :  { %vm1329_vm14 = vmor %vm1327_vm13, %vm1328_vm12 }
 0xc5a   :  { %v1324_v17 = vsub.f32 1.0, %v1323_v27 }
 0xc5c   :  { %v1325_v13 = vmul.f32 %v1726_v31, %v1324_v17 }
 0xc5e   :  { %v1326_v38 = vadd.f32 %v1726_v31, %v1325_v13 }
 0xc60   :  { %v1330_v34 = vsel %vm1329_vm14, %v1726_v31, %v1326_v38 }
 0xc61   :  { %v1335_v54 = vsel %vm1332_vm15, %v1334_v35, %v1330_v34 }
 0xc62   :  { %v1338_v30 = vmul.f32 %v1337_v5, %v1335_v54  ;;  %v1341_v57 = vsub.f32 1.0, %v1335_v54  ;;  %v1347_v63 = vmul.f32 %v1335_v54, %v2352_v61 }
 0xc64   :  { %v1339_v40 = vadd.f32 %v1338_v30, %v189_v55 }
 0xc66   :  { %1727 = vtanh.f32 %v1339_v40 }
 0xc6c   :  { %v1728_v6 = vpop.eup %1727 }
 0xc6d   :  { %1343 = vrot.lane.b32.xlu2 %v1728_v6, %s1801_s15 }
 0xcaf   :  { %v1230_v33 = vpop.f32.mrf.mxu0  ;;  %v1243_v4 = vpop.f32.mrf.mxu1 }
 0xcb0   :  { %v1268_v9 = vadd.f32 %v1243_v4, %v2033_v12  ;;  %v1247_v59 = vadd.f32 %v2341_v43, %v1230_v33  ;;  %v1267_v46 = vadd.f32 %v2347_v42, %v1243_v4 }
 0xcb2   :  { %1270 = vrot.lane.b32.xlu0 %v1268_v9, %s1801_s15  ;;  %v1600_v26 = vmul.f32 -1.442695, %v1247_v59 }
 0xcb4   :  { %1729 = vpow2.f32 %v1600_v26 }
 0xcb7   :  { %v1232_v15 = vpop.f32.mrf.mxu0  ;;  %v1245_v23 = vpop.f32.mrf.mxu1 }
 0xcba   :  { %v1730_v28 = vpop.eup %1729 }
 0xcbb   :  { %v1251_v18 = vadd.f32 1.0, %v1730_v28 }
 0xcbd   :  { %1731 = vrcp.f32 %v1251_v18  ;;  %v1263_v1 = vand.u32 2147483648, %v1251_v18  ;;  %vm1257_vm1 = vweird.f32 %v1251_v18  ;;  %v1261_v52 = vand.u32 2147483647, %v1251_v18 }
 0xcbf   :  { %v1264_v16 = vor.u32 1.1754944e-38, %v1263_v1  ;;  %vm1262_vm3 = vcmp.eq.f32.partialorder %v1261_v52, 8.507059e+37 }
 0xcc3   :  { %v1732_v36 = vpop.eup %1731 }
 0xcc4   :  { %v1253_v29 = vmul.f32 %v1732_v36, %v1251_v18  ;;  %vm1258_vm0 = vweird.f32 %v1732_v36 }
 0xcc5   :  { %vm1259_vm2 = vmor %vm1257_vm1, %vm1258_vm0 }
 0xcc6   :  { %v1254_v20 = vsub.f32 1.0, %v1253_v29 }
 0xcc7   :  { %v1344_v56 = vpop.permute.xlu2 %1343 }
 0xcc8   :  { %v1255_v32 = vmul.f32 %v1732_v36, %v1254_v20  ;;  %v1346_v37 = vmul.f32 %v1344_v56, %v1341_v57 }
 0xcca   :  { %v1256_v14 = vadd.f32 %v1732_v36, %v1255_v32  ;;  %v1348_v7 = vadd.f32 %v1347_v63, %v1346_v37 }
 0xccc   :  { %v1260_v51 = vsel %vm1259_vm2, %v1732_v36, %v1256_v14 }
 0xccd   :  { %v1265_v25 = vsel %vm1262_vm3, %v1264_v16, %v1260_v51 }
 0xcce   :  { %v1276_v11 = vsub.f32 1.0, %v1265_v25  ;;  %v1282_v3 = vmul.f32 %v1265_v25, %v2358_v62  ;;  %v1643_v62 = vld [vmem:[%s2404_s9] ss:$0 sm:$0xff] }
 0xd24   :  { %v1271_v47 = vpop.permute.xlu0 %1270 }
 0xd25   :  { %v1273_v44 = vmul.f32 %v1271_v47, %v1265_v25 }
 0xd27   :  { %v1274_v2 = vadd.f32 %v1273_v44, %v1267_v46 }
 0xd29   :  { %1733 = vtanh.f32 %v1274_v2 }
 0xd2f   :  { %v1734_v0 = vpop.eup %1733 }
 0xd30   :  { %1278 = vrot.lane.b32.xlu1 %v1734_v0, %s1801_s15 }
 0xda2   :  { %v1279_v45 = vpop.permute.xlu1 %1278 }
 0xda3   :  { %v1281_v48 = vmul.f32 %v1279_v45, %v1276_v11 }
 0xda5   :  { %v1283_v53 = vadd.f32 %v1282_v3, %v1281_v48 }
 0xda7   :  { %1350 = vrot.lane.b32.xlu0 %v1283_v53, %s1801_s15 }
 0xdaf   :  { %1421 = vrot.lane.b32.xlu0 %v1643_v62, %s1801_s15 }
 0xe19   :  { %v1351_v10 = vpop.permute.xlu0 %1350 }
 0xe1a   :  { %v1353_v19 = vsel %vm254_vm6, %v1351_v10, %v1348_v7 }
 0xe1b   :  { %v1354_v21 = vpack.c.bf16 %v1353_v19, %v1353_v19 }
 0xe1d   :  { %1363 = vmatmul.bf16.vlgmr.msra.gmra.mxu2 %v1354_v21  ;;  %1376 = vmatmul.bf16.vlgmr.msra.gmra.mxu3 %v1354_v21 }
 0xe21   :  { %v1422_v15 = vpop.permute.xlu0 %1421 }
 0xea0   :  { %v1364_v22 = vpop.f32.mrf.mxu2  ;;  %v1377_v39 = vpop.f32.mrf.mxu3 }
 0xea1   :  { %v1402_v41 = vadd.f32 %v1377_v39, %v2033_v12  ;;  %v1381_v50 = vadd.f32 %v2341_v43, %v1364_v22  ;;  %v1401_v54 = vadd.f32 %v2347_v42, %v1377_v39  ;;  %v1644_v42 = vld [vmem:[#allocation2] ss:$0 sm:$0xff] }
 0xea3   :  { %1404 = vrot.lane.b32.xlu1 %v1402_v41, %s1801_s15  ;;  %v1604_v58 = vmul.f32 -1.442695, %v1381_v50 }
 0xea5   :  { %1735 = vpow2.f32 %v1604_v58 }
 0xea8   :  { %v1366_v61 = vpop.f32.mrf.mxu2  ;;  %v1379_v49 = vpop.f32.mrf.mxu3 }
 0xeab   :  { %v1736_v60 = vpop.eup %1735 }
 0xeac   :  { %v1385_v31 = vadd.f32 1.0, %v1736_v60 }
 0xeae   :  { %1737 = vrcp.f32 %v1385_v31  ;;  %v1397_v38 = vand.u32 2147483648, %v1385_v31  ;;  %vm1391_vm5 = vweird.f32 %v1385_v31  ;;  %v1395_v12 = vand.u32 2147483647, %v1385_v31 }
 0xeb0   :  { %v1398_v34 = vor.u32 1.1754944e-38, %v1397_v38  ;;  %vm1396_vm8 = vcmp.eq.f32.partialorder %v1395_v12, 8.507059e+37 }
 0xeb4   :  { %v1738_v27 = vpop.eup %1737 }
 0xeb5   :  { %v1387_v17 = vmul.f32 %v1738_v27, %v1385_v31  ;;  %vm1392_vm4 = vweird.f32 %v1738_v27 }
 0xeb6   :  { %vm1393_vm7 = vmor %vm1391_vm5, %vm1392_vm4 }
 0xeb7   :  { %v1388_v24 = vsub.f32 1.0, %v1387_v17 }
 0xeb9   :  { %v1389_v13 = vmul.f32 %v1738_v27, %v1388_v24 }
 0xebb   :  { %v1390_v8 = vadd.f32 %v1738_v27, %v1389_v13 }
 0xebd   :  { %v1394_v35 = vsel %vm1393_vm7, %v1738_v27, %v1390_v8 }
 0xebe   :  { %v1399_v43 = vsel %vm1396_vm8, %v1398_v34, %v1394_v35 }
 0xebf   :  { %v1410_v6 = vsub.f32 1.0, %v1399_v43  ;;  %v1416_v9 = vmul.f32 %v1399_v43, %v1283_v53 }
 0xf15   :  { %v1405_v5 = vpop.permute.xlu1 %1404 }
 0xf16   :  { %v1407_v55 = vmul.f32 %v1405_v5, %v1399_v43 }
 0xf18   :  { %v1408_v30 = vadd.f32 %v1407_v55, %v1401_v54 }
 0xf1a   :  { %1739 = vtanh.f32 %v1408_v30 }
 0xf20   :  { %v1740_v40 = vpop.eup %1739 }
 0xf21   :  { %1412 = vrot.lane.b32.xlu2 %v1740_v40, %s1801_s15 }
 0xf7b   :  { %v1413_v33 = vpop.permute.xlu2 %1412 }
 0xf7c   :  { %v1415_v4 = vmul.f32 %v1413_v33, %v1410_v6 }
 0xf7e   :  { %v1417_v23 = vadd.f32 %v1416_v9, %v1415_v4 }
 0xf80   :  { %v1424_v59 = vmul.f32 %v1422_v15, %v1417_v23 }
 0xf82   :  { %1426 = vrot.lane.b32.xlu1 %v1424_v59, %s1801_s15 }
 0xff4   :  { %v1427_v26 = vpop.permute.xlu1 %1426 }
 0xff5   :  { %v1429_v28 = vsel %vm254_vm6, %v1427_v26, 0.0 }
 0xff6   :  { %1430 = vadd.xlane.f32.xlu2 %v1429_v28 }
0x1069   :  { %v1431_v18 = vpop.xlane.xlu2 %1430 }
0x106a   :  { %v1436_v36 = vadd.f32 %v1644_v42, %v1431_v18 }
0x106c   :  { %1438 = vst.msk [vmem:[%s2406_s11] sm:$0xff] %vm1437_vm9, %v1436_v36 }
0x106d   :  { %1443 = vsyncpa [#allocation4], 1 }
0x106e   :  { %1444 = vsyncpa [#allocation6], 1 }

</bundles_post_ra>
